<compile_context>
chip_gen: v7x
topology: tpu7x:2x2x1
jax: 0.10.0
libtpu: 0.0.40
codegen_flags: <defaults>
</compile_context>

<pallas_src>
import functools
import math

import jax
import jax.numpy as jnp
from jax.experimental import pallas as pl
from jax.experimental.pallas import tpu as pltpu

_COMPILER_PARAMS = pltpu.CompilerParams(vmem_limit_bytes=32 * 1024 * 1024)


# --------------------------------------------------------------------------------
# in-kernel helpers
# --------------------------------------------------------------------------------
def _layer_norm(v, g, b, eps):
    mu = jnp.mean(v, axis=-1, keepdims=True)
    var = jnp.mean(jnp.square(v - mu), axis=-1, keepdims=True)
    return (v - mu) * jax.lax.rsqrt(var + eps) * g + b


def _encoder_stack(x, ma_ref, mb_ref, vc_ref, *, num_layers, num_heads, eps):
    """nn.TransformerEncoder stack, fully VMEM/vreg resident.

    x:       (B, S, E) float32 activations (positional encoding already added)
    ma_ref:  (L, E, 3E + H)      [ Wqkv (1/sqrt(dh) folded into Q cols) | W1 ]
    mb_ref:  (L, E + H, E)       [ Wo ; W2 ]
    vc_ref:  (L, 8, max(3E, H))  rows = bqkv, b1, bo, b2, ln1_g, ln1_b, ln2_g, ln2_b
    """
    B, S, E = x.shape
    H = mb_ref.shape[1] - E
    dh = E // num_heads
    BS = B * S

    xf = x.reshape(BS, E)                       # flatten batch into matmul rows
    for l in range(num_layers):                 # static unroll: weights stay resident
        ma = ma_ref[l]                          # (E, 3E + H)
        mb = mb_ref[l]                          # (E + H, E)
        vc = vc_ref[l]                          # (8, W)
        wqkv, w1 = ma[:, :3 * E], ma[:, 3 * E:3 * E + H]
        wo, w2 = mb[:E, :], mb[E:, :]
        bqkv = vc[0:1, :3 * E]
        b1 = vc[1:2, :H]
        bo = vc[2:3, :E]
        b2 = vc[3:4, :E]
        g1, be1 = vc[4:5, :E], vc[5:6, :E]
        g2, be2 = vc[6:7, :E], vc[7:8, :E]

        # fused Q/K/V projection: one MXU push per layer on (B*S) rows
        qkv = jnp.dot(xf, wqkv, preferred_element_type=jnp.float32) + bqkv   # (BS, 3E)
        qkv3 = qkv.reshape(B, S, 3 * E)

        attn = None
        for h in range(num_heads):
            lo = h * dh
            qh = qkv3[:, :, lo:lo + dh]                   # scale already folded into Wq/bq
            kh = qkv3[:, :, E + lo:E + lo + dh]
            vh = qkv3[:, :, 2 * E + lo:2 * E + lo + dh]
            s = jax.lax.dot_general(qh, kh, (((2,), (2,)), ((0,), (0,))),
                                    preferred_element_type=jnp.float32)      # (B, S, S)
            s = s - jnp.max(s, axis=-1, keepdims=True)
            p = jnp.exp(s)
            p = p * pl.reciprocal(jnp.sum(p, axis=-1, keepdims=True), approx=True)
            oh = jax.lax.dot_general(p, vh, (((2,), (1,)), ((0,), (0,))),
                                     preferred_element_type=jnp.float32)     # (B, S, dh)
            # concat(heads) @ Wo == sum_h oh @ Wo[lo:hi, :]   (avoids a lane concat)
            c = jnp.dot(oh.reshape(BS, dh), wo[lo:lo + dh, :],
                        preferred_element_type=jnp.float32)                  # (BS, E)
            attn = c if attn is None else attn + c
        attn = attn + bo

        # TODO(synk): dropout layers are stochastic in train mode; eval-mode identity used.
        xf = _layer_norm(xf + attn, g1, be1, eps)          # post-norm (norm_first=False)
        ff = jnp.maximum(jnp.dot(xf, w1, preferred_element_type=jnp.float32) + b1, 0.0)
        ff = jnp.dot(ff, w2, preferred_element_type=jnp.float32) + b2
        xf = _layer_norm(xf + ff, g2, be2, eps)
    return xf.reshape(B, S, E)


# --------------------------------------------------------------------------------
# fused full-forward kernels (one pallas_call per branch)
# --------------------------------------------------------------------------------
def _forward_kernel(x_ref, phi_ref, pe_s_ref, pe_p_ref,
                    s_ma, s_mb, s_vc, m_ma, m_mb, m_vc,
                    hw_ref, hb_ref, o_ref,
                    *, num_layers, num_heads, eps, average_pool):
    B, S, E = x_ref.shape
    Bp, Sp, P = phi_ref.shape

    xs = _encoder_stack(x_ref[...] + pe_s_ref[...], s_ma, s_mb, s_vc,
                        num_layers=num_layers, num_heads=num_heads, eps=eps)
    # TODO(synk): on v7x the two independent stacks could run on the 2 TensorCores
    # (pl.core_map / core-parallel grid); kept single-core here — both stacks fit in a
    # few vregs and the whole body is launch-cost bound.
    xp = _encoder_stack(phi_ref[...] + pe_p_ref[...], m_ma, m_mb, m_vc,
                        num_layers=num_layers, num_heads=num_heads, eps=eps)

    if average_pool:
        ps = jnp.mean(xs, axis=1)                 # (B,  E)
        pp = jnp.mean(xp, axis=1)                 # (Bp, P)
    else:
        ps = xs[:, S - 1, :]                      # last token
        pp = xp[:, Sp - 1, :]
    pp = jnp.broadcast_to(pp, (B, P))             # phi.expand(x.shape[0], -1)

    ws = hw_ref[0:E, :]                           # (E, 1)
    wp = hw_ref[E:E + P, :]                       # (P, 1)
    o_ref[...] = (jnp.dot(ps, ws, preferred_element_type=jnp.float32)
                  + jnp.dot(pp, wp, preferred_element_type=jnp.float32)
                  + hb_ref[...])


def _sanity_kernel(x_ref, s_ma, s_mb, s_vc, hw_ref, hb_ref, o_ref,
                   *, num_layers, num_heads, eps, inv_t):
    x = x_ref[...]                                # (B, T, M)
    # custom softmax(input, t): ex = exp(x/t); ex / sum(ex, axis=1)   (no max-subtraction)
    ex = jnp.exp(x * inv_t)
    ssum = jnp.sum(ex, axis=1)                    # (B, M)
    sm = ex / ssum[None, :, :]                    # right-aligned (B,T,M)/(B,M) PyTorch quirk
    # TODO(synk): torch.cat((x.double(), x), 1) promotes to float64; stays float32 on TPU.
    x2 = jnp.concatenate([sm, sm], axis=1)        # duplicated token sequence
    xs = _encoder_stack(x2, s_ma, s_mb, s_vc,
                        num_layers=num_layers, num_heads=num_heads, eps=eps)
    ps = jnp.mean(xs, axis=1)                     # mean(dim=1)
    o_ref[...] = jnp.dot(ps, hw_ref[...], preferred_element_type=jnp.float32) + hb_ref[...]


# --------------------------------------------------------------------------------
# host-side one-off weight packing (hoisted out of the jitted per-call graph)
# --------------------------------------------------------------------------------
def prepare_encoder_stack(layers, num_heads):
    """PyTorch-layout per-layer weights -> 3 packed kernel operands, scale folded in."""
    E = layers[0]["out_w"].shape[0]
    H = layers[0]["lin1_w"].shape[0]
    dh = E // num_heads
    scale = 1.0 / math.sqrt(dh)
    W = max(3 * E, H)

    def row(v):
        v = jnp.asarray(v, jnp.float32)
        return jnp.pad(v, (0, W - v.shape[0]))

    ma, mb, vc = [], [], []
    for p in layers:
        wqkv = jnp.asarray(p["in_w"], jnp.float32).T          # (E, 3E)
        bqkv = jnp.asarray(p["in_b"], jnp.float32)            # (3E,)
        wqkv = wqkv.at[:, :E].multiply(scale)                  # fold 1/sqrt(dh) into Q
        bqkv = bqkv.at[:E].multiply(scale)
        w1 = jnp.asarray(p["lin1_w"], jnp.float32).T          # (E, H)
        wo = jnp.asarray(p["out_w"], jnp.float32).T           # (E, E)
        w2 = jnp.asarray(p["lin2_w"], jnp.float32).T          # (H, E)
        ma.append(jnp.concatenate([wqkv, w1], axis=1))        # (E, 3E + H)
        mb.append(jnp.concatenate([wo, w2], axis=0))          # (E + H, E)
        vc.append(jnp.stack([row(bqkv), row(p["lin1_b"]), row(p["out_b"]),
                             row(p["lin2_b"]), row(p["ln1_g"]), row(p["ln1_b"]),
                             row(p["ln2_g"]), row(p["ln2_b"])]))      # (8, W)
    return jnp.stack(ma), jnp.stack(mb), jnp.stack(vc)


def prepare_params(params, num_heads, sanity_check=False):
    prep = {}
    prep["s_ma"], prep["s_mb"], prep["s_vc"] = prepare_encoder_stack(
        params["sound_layers"], num_heads)
    if not sanity_check:
        prep["m_ma"], prep["m_mb"], prep["m_vc"] = prepare_encoder_stack(
            params["mod_layers"], num_heads)
    prep["head_w"] = jnp.asarray(params["linear_w"], jnp.float32).T      # (in_features, 1)
    prep["head_b"] = jnp.asarray(params["linear_b"], jnp.float32).reshape(1, 1)
    return prep


def positional_encoding(seq_len, d_model, max_len=4000):
    seq_cut = min(seq_len, max_len)
    pos = jnp.arange(seq_cut, dtype=jnp.float32)[:, None]
    div = jnp.exp(jnp.arange(0, d_model, 2, dtype=jnp.float32)
                  * (-math.log(10000.0) / d_model))
    ang = pos * div
    pe = jnp.zeros((seq_cut, d_model), jnp.float32)
    pe = pe.at[:, 0::2].set(jnp.sin(ang))
    pe = pe.at[:, 1::2].set(jnp.cos(ang))
    return pe[None]                                # (1, seq_cut, d_model)


# --------------------------------------------------------------------------------
# wrappers (one pallas_call per forward)
# --------------------------------------------------------------------------------
def transformer_forward(prep, x, phi, pe_s, pe_p, *, num_heads, average_pool=False):
    B, S, E = x.shape
    if phi is None:
        phi = jnp.zeros((B, S, 4), jnp.float32)
    kernel = functools.partial(_forward_kernel, num_layers=prep["s_ma"].shape[0],
                               num_heads=num_heads, eps=1e-5, average_pool=average_pool)
    return pl.pallas_call(
        kernel,
        out_shape=jax.ShapeDtypeStruct((B, 1), jnp.float32),
        compiler_params=_COMPILER_PARAMS,
    )(x.astype(jnp.float32), phi.astype(jnp.float32),
      pe_s.astype(jnp.float32), pe_p.astype(jnp.float32),
      prep["s_ma"], prep["s_mb"], prep["s_vc"],
      prep["m_ma"], prep["m_mb"], prep["m_vc"],
      prep["head_w"], prep["head_b"])


def transformer_forward_sanity(prep, x, *, num_heads):
    B, T, M = x.shape
    bshape = jnp.broadcast_shapes((B, T, M), (B, M))   # the custom softmax's broadcast quirk
    kernel = functools.partial(_sanity_kernel, num_layers=prep["s_ma"].shape[0],
                               num_heads=num_heads, eps=1e-5, inv_t=1.0 / 0.01)
    return pl.pallas_call(
        kernel,
        out_shape=jax.ShapeDtypeStruct((bshape[0], 1), jnp.float32),
        compiler_params=_COMPILER_PARAMS,
    )(x.astype(jnp.float32), prep["s_ma"], prep["s_mb"], prep["s_vc"],
      prep["head_w"], prep["head_b"])


# --------------------------------------------------------------------------------
# deterministic example parameters (PyTorch tensor layouts)
# --------------------------------------------------------------------------------
def _linear_init(key, out_f, in_f):
    kw, kb = jax.random.split(key)
    bound = 1.0 / math.sqrt(in_f)
    w = jax.random.uniform(kw, (out_f, in_f), jnp.float32, -bound, bound)
    b = jax.random.uniform(kb, (out_f,), jnp.float32, -bound, bound)
    return w, b


def init_encoder_layer(key, d_model, dim_ff):
    k = jax.random.split(key, 4)
    in_w, in_b = _linear_init(k[0], 3 * d_model, d_model)
    out_w, out_b = _linear_init(k[1], d_model, d_model)
    lin1_w, lin1_b = _linear_init(k[2], dim_ff, d_model)
    lin2_w, lin2_b = _linear_init(k[3], d_model, dim_ff)
    ones, zeros = jnp.ones((d_model,), jnp.float32), jnp.zeros((d_model,), jnp.float32)
    return dict(in_w=in_w, in_b=in_b, out_w=out_w, out_b=out_b,
                lin1_w=lin1_w, lin1_b=lin1_b, lin2_w=lin2_w, lin2_b=lin2_b,
                ln1_g=ones, ln1_b=zeros, ln2_g=ones, ln2_b=zeros)


def init_params(key, input_dim, hidden_dim, num_layers, num_heads, sanity_check=False):
    keys = jax.random.split(key, 2 * num_layers + 1)
    p = {"sound_layers": [init_encoder_layer(keys[i], input_dim, hidden_dim)
                          for i in range(num_layers)]}
    if sanity_check:
        w, b = _linear_init(keys[-1], 1, input_dim)
    else:
        p["mod_layers"] = [init_encoder_layer(keys[num_layers + i], 4, hidden_dim)
                           for i in range(num_layers)]
        w, b = _linear_init(keys[-1], 1, input_dim + 4)
    p["linear_w"], p["linear_b"] = w, b
    return p


if __name__ == "__main__":
    input_dim = 4          # d_model of the sound transformer (== num_microphones)
    hidden_dim = 32
    num_layers = 2
    num_heads = 2          # must divide both input_dim and 4 (modulation d_model)
    B, T = 2, 8

    key = jax.random.PRNGKey(0)
    k_p, k_ps, k_x, k_phi, k_xs = jax.random.split(key, 5)

    # ---- default construction: sanity_check=False, average_pool=False -------------
    params = init_params(k_p, input_dim, hidden_dim, num_layers, num_heads,
                         sanity_check=False)
    prep = prepare_params(params, num_heads, sanity_check=False)   # hoisted out of jit
    pe_s = positional_encoding(T, input_dim)                       # constants, pre-built
    pe_p = positional_encoding(T, 4)

    x = jax.random.normal(k_x, (B, T, input_dim), jnp.float32)
    phi = 0.1 * jax.random.normal(k_phi, (1, T, 4), jnp.float32)

    fwd = jax.jit(functools.partial(transformer_forward, num_heads=num_heads,
                                    average_pool=False))
    out = jax.block_until_ready(fwd(prep, x, phi, pe_s, pe_p))
    assert out.shape == (B, 1), out.shape

    # ---- sanity_check branch: softmax(x, 0.01) + duplicated sequence + mean + linear
    params_s = init_params(k_ps, input_dim, hidden_dim, num_layers, num_heads,
                           sanity_check=True)
    prep_s = prepare_params(params_s, num_heads, sanity_check=True)
    # The custom softmax broadcasts (B,T,M)/(B,M): needs T == B (or B == 1); keep |x|
    # small so exp(x / 0.01) stays finite (the module itself offers no protection).
    x_s = 0.01 * jax.random.uniform(k_xs, (B, B, input_dim), jnp.float32, -1.0, 1.0)
    fwd_s = jax.jit(functools.partial(transformer_forward_sanity, num_heads=num_heads))
    out_s = jax.block_until_ready(fwd_s(prep_s, x_s))
    assert out_s.shape == (B, 1), out_s.shape

    assert bool(jnp.all(jnp.isfinite(out))) and bool(jnp.all(jnp.isfinite(out_s)))
    print("KERNEL_OK")
</pallas_src>

<mosaic_0001>
module attributes {stable_mosaic.version = 11 : i64} {
  func.func @_forward_kernel(%arg0: memref<2x8x4xf32, #tpu.memory_space<vmem>>, %arg1: memref<1x8x4xf32, #tpu.memory_space<vmem>>, %arg2: memref<1x8x4xf32, #tpu.memory_space<vmem>>, %arg3: memref<1x8x4xf32, #tpu.memory_space<vmem>>, %arg4: memref<2x4x44xf32, #tpu.memory_space<vmem>>, %arg5: memref<2x36x4xf32, #tpu.memory_space<vmem>>, %arg6: memref<2x8x32xf32, #tpu.memory_space<vmem>>, %arg7: memref<2x4x44xf32, #tpu.memory_space<vmem>>, %arg8: memref<2x36x4xf32, #tpu.memory_space<vmem>>, %arg9: memref<2x8x32xf32, #tpu.memory_space<vmem>>, %arg10: memref<8x1xf32, #tpu.memory_space<vmem>>, %arg11: memref<1x1xf32, #tpu.memory_space<vmem>>, %arg12: memref<2x1xf32, #tpu.memory_space<vmem>>) attributes {dimension_semantics = [], scalar_prefetch = 0 : i64, scratch_operands = 0 : i64, tpu.core_type = #tpu.core_type<tc>} {
    %c0 = arith.constant 0 : index
    %c0_0 = arith.constant 0 : index
    %c0_1 = arith.constant 0 : index
    %0 = vector.load %arg0[%c0, %c0_0, %c0_1] : memref<2x8x4xf32, #tpu.memory_space<vmem>>, vector<2x8x4xf32>
    %c0_2 = arith.constant 0 : index
    %c0_3 = arith.constant 0 : index
    %c0_4 = arith.constant 0 : index
    %1 = vector.load %arg2[%c0_2, %c0_3, %c0_4] : memref<1x8x4xf32, #tpu.memory_space<vmem>>, vector<1x8x4xf32>
    %2 = vector.broadcast %1 : vector<1x8x4xf32> to vector<2x8x4xf32>
    %3 = arith.addf %0, %2 : vector<2x8x4xf32>
    %4 = vector.shape_cast %3 : vector<2x8x4xf32> to vector<16x4xf32>
    %c0_5 = arith.constant 0 : index
    %c0_6 = arith.constant 0 : index
    %c0_7 = arith.constant 0 : index
    %5 = vector.load %arg4[%c0_5, %c0_6, %c0_7] : memref<2x4x44xf32, #tpu.memory_space<vmem>>, vector<1x4x44xf32>
    %6 = vector.shape_cast %5 : vector<1x4x44xf32> to vector<4x44xf32>
    %c0_8 = arith.constant 0 : index
    %c0_9 = arith.constant 0 : index
    %c0_10 = arith.constant 0 : index
    %7 = vector.load %arg5[%c0_8, %c0_9, %c0_10] : memref<2x36x4xf32, #tpu.memory_space<vmem>>, vector<1x36x4xf32>
    %8 = vector.shape_cast %7 : vector<1x36x4xf32> to vector<36x4xf32>
    %c0_11 = arith.constant 0 : index
    %c0_12 = arith.constant 0 : index
    %c0_13 = arith.constant 0 : index
    %9 = vector.load %arg6[%c0_11, %c0_12, %c0_13] : memref<2x8x32xf32, #tpu.memory_space<vmem>>, vector<1x8x32xf32>
    %10 = vector.shape_cast %9 : vector<1x8x32xf32> to vector<8x32xf32>
    %11 = vector.extract_strided_slice %6 {offsets = [0, 0], sizes = [4, 12], strides = [1, 1]} : vector<4x44xf32> to vector<4x12xf32>
    %12 = vector.extract_strided_slice %6 {offsets = [0, 12], sizes = [4, 32], strides = [1, 1]} : vector<4x44xf32> to vector<4x32xf32>
    %13 = vector.extract_strided_slice %8 {offsets = [0, 0], sizes = [4, 4], strides = [1, 1]} : vector<36x4xf32> to vector<4x4xf32>
    %14 = vector.extract_strided_slice %8 {offsets = [4, 0], sizes = [32, 4], strides = [1, 1]} : vector<36x4xf32> to vector<32x4xf32>
    %15 = vector.extract_strided_slice %10 {offsets = [0, 0], sizes = [1, 12], strides = [1, 1]} : vector<8x32xf32> to vector<1x12xf32>
    %16 = vector.extract_strided_slice %10 {offsets = [1, 0], sizes = [1, 32], strides = [1, 1]} : vector<8x32xf32> to vector<1x32xf32>
    %17 = vector.extract_strided_slice %10 {offsets = [2, 0], sizes = [1, 4], strides = [1, 1]} : vector<8x32xf32> to vector<1x4xf32>
    %18 = vector.extract_strided_slice %10 {offsets = [3, 0], sizes = [1, 4], strides = [1, 1]} : vector<8x32xf32> to vector<1x4xf32>
    %19 = vector.extract_strided_slice %10 {offsets = [4, 0], sizes = [1, 4], strides = [1, 1]} : vector<8x32xf32> to vector<1x4xf32>
    %20 = vector.extract_strided_slice %10 {offsets = [5, 0], sizes = [1, 4], strides = [1, 1]} : vector<8x32xf32> to vector<1x4xf32>
    %21 = vector.extract_strided_slice %10 {offsets = [6, 0], sizes = [1, 4], strides = [1, 1]} : vector<8x32xf32> to vector<1x4xf32>
    %22 = vector.extract_strided_slice %10 {offsets = [7, 0], sizes = [1, 4], strides = [1, 1]} : vector<8x32xf32> to vector<1x4xf32>
    %cst = arith.constant dense<0.000000e+00> : vector<16x12xf32>
    %23 = tpu.matmul %4, %11, %cst {dimension_numbers = #tpu.dot_dimension_numbers<[1], [0], [0], [1], [0, 0, 1, 1], [], []>} : vector<16x4xf32>, vector<4x12xf32>, vector<16x12xf32> -> vector<16x12xf32>
    %24 = vector.broadcast %15 : vector<1x12xf32> to vector<16x12xf32>
    %25 = arith.addf %23, %24 : vector<16x12xf32>
    %26 = vector.shape_cast %25 : vector<16x12xf32> to vector<2x8x12xf32>
    %27 = vector.extract_strided_slice %26 {offsets = [0, 0, 0], sizes = [2, 8, 2], strides = [1, 1, 1]} : vector<2x8x12xf32> to vector<2x8x2xf32>
    %28 = vector.extract_strided_slice %26 {offsets = [0, 0, 4], sizes = [2, 8, 2], strides = [1, 1, 1]} : vector<2x8x12xf32> to vector<2x8x2xf32>
    %29 = vector.extract_strided_slice %26 {offsets = [0, 0, 8], sizes = [2, 8, 2], strides = [1, 1, 1]} : vector<2x8x12xf32> to vector<2x8x2xf32>
    %cst_14 = arith.constant dense<0.000000e+00> : vector<2x8x8xf32>
    %30 = tpu.matmul %27, %28, %cst_14 {dimension_numbers = #tpu.dot_dimension_numbers<[2], [2], [1], [1], [0, 0, 0, 1, 1, 1], [0], [0]>} : vector<2x8x2xf32>, vector<2x8x2xf32>, vector<2x8x8xf32> -> vector<2x8x8xf32>
    %cst_15 = arith.constant dense<0xFF800000> : vector<2x8xf32>
    %31 = vector.multi_reduction <maximumf>, %30, %cst_15 [2] : vector<2x8x8xf32> to vector<2x8xf32>
    %32 = vector.shape_cast %31 : vector<2x8xf32> to vector<2x8x1xf32>
    %33 = vector.broadcast %32 : vector<2x8x1xf32> to vector<2x8x8xf32>
    %34 = arith.subf %30, %33 : vector<2x8x8xf32>
    %35 = math.exp %34 : vector<2x8x8xf32>
    %cst_16 = arith.constant dense<0.000000e+00> : vector<2x8xf32>
    %36 = vector.multi_reduction <add>, %35, %cst_16 [2] : vector<2x8x8xf32> to vector<2x8xf32>
    %37 = vector.shape_cast %36 : vector<2x8xf32> to vector<2x8x1xf32>
    %38 = tpu.reciprocal %37 {approx = true} : vector<2x8x1xf32> -> vector<2x8x1xf32>
    %39 = vector.broadcast %38 : vector<2x8x1xf32> to vector<2x8x8xf32>
    %40 = arith.mulf %35, %39 : vector<2x8x8xf32>
    %cst_17 = arith.constant dense<0.000000e+00> : vector<2x8x2xf32>
    %41 = tpu.matmul %40, %29, %cst_17 {dimension_numbers = #tpu.dot_dimension_numbers<[2], [1], [1], [2], [0, 0, 0, 1, 1, 2], [0], [0]>} : vector<2x8x8xf32>, vector<2x8x2xf32>, vector<2x8x2xf32> -> vector<2x8x2xf32>
    %42 = vector.shape_cast %41 : vector<2x8x2xf32> to vector<16x2xf32>
    %43 = vector.extract_strided_slice %13 {offsets = [0, 0], sizes = [2, 4], strides = [1, 1]} : vector<4x4xf32> to vector<2x4xf32>
    %cst_18 = arith.constant dense<0.000000e+00> : vector<16x4xf32>
    %44 = tpu.matmul %42, %43, %cst_18 {dimension_numbers = #tpu.dot_dimension_numbers<[1], [0], [0], [1], [0, 0, 1, 1], [], []>} : vector<16x2xf32>, vector<2x4xf32>, vector<16x4xf32> -> vector<16x4xf32>
    %45 = vector.extract_strided_slice %26 {offsets = [0, 0, 2], sizes = [2, 8, 2], strides = [1, 1, 1]} : vector<2x8x12xf32> to vector<2x8x2xf32>
    %46 = vector.extract_strided_slice %26 {offsets = [0, 0, 6], sizes = [2, 8, 2], strides = [1, 1, 1]} : vector<2x8x12xf32> to vector<2x8x2xf32>
    %47 = vector.extract_strided_slice %26 {offsets = [0, 0, 10], sizes = [2, 8, 2], strides = [1, 1, 1]} : vector<2x8x12xf32> to vector<2x8x2xf32>
    %cst_19 = arith.constant dense<0.000000e+00> : vector<2x8x8xf32>
    %48 = tpu.matmul %45, %46, %cst_19 {dimension_numbers = #tpu.dot_dimension_numbers<[2], [2], [1], [1], [0, 0, 0, 1, 1, 1], [0], [0]>} : vector<2x8x2xf32>, vector<2x8x2xf32>, vector<2x8x8xf32> -> vector<2x8x8xf32>
    %cst_20 = arith.constant dense<0xFF800000> : vector<2x8xf32>
    %49 = vector.multi_reduction <maximumf>, %48, %cst_20 [2] : vector<2x8x8xf32> to vector<2x8xf32>
    %50 = vector.shape_cast %49 : vector<2x8xf32> to vector<2x8x1xf32>
    %51 = vector.broadcast %50 : vector<2x8x1xf32> to vector<2x8x8xf32>
    %52 = arith.subf %48, %51 : vector<2x8x8xf32>
    %53 = math.exp %52 : vector<2x8x8xf32>
    %cst_21 = arith.constant dense<0.000000e+00> : vector<2x8xf32>
    %54 = vector.multi_reduction <add>, %53, %cst_21 [2] : vector<2x8x8xf32> to vector<2x8xf32>
    %55 = vector.shape_cast %54 : vector<2x8xf32> to vector<2x8x1xf32>
    %56 = tpu.reciprocal %55 {approx = true} : vector<2x8x1xf32> -> vector<2x8x1xf32>
    %57 = vector.broadcast %56 : vector<2x8x1xf32> to vector<2x8x8xf32>
    %58 = arith.mulf %53, %57 : vector<2x8x8xf32>
    %cst_22 = arith.constant dense<0.000000e+00> : vector<2x8x2xf32>
    %59 = tpu.matmul %58, %47, %cst_22 {dimension_numbers = #tpu.dot_dimension_numbers<[2], [1], [1], [2], [0, 0, 0, 1, 1, 2], [0], [0]>} : vector<2x8x8xf32>, vector<2x8x2xf32>, vector<2x8x2xf32> -> vector<2x8x2xf32>
    %60 = vector.shape_cast %59 : vector<2x8x2xf32> to vector<16x2xf32>
    %61 = vector.extract_strided_slice %13 {offsets = [2, 0], sizes = [2, 4], strides = [1, 1]} : vector<4x4xf32> to vector<2x4xf32>
    %cst_23 = arith.constant dense<0.000000e+00> : vector<16x4xf32>
    %62 = tpu.matmul %60, %61, %cst_23 {dimension_numbers = #tpu.dot_dimension_numbers<[1], [0], [0], [1], [0, 0, 1, 1], [], []>} : vector<16x2xf32>, vector<2x4xf32>, vector<16x4xf32> -> vector<16x4xf32>
    %63 = arith.addf %44, %62 : vector<16x4xf32>
    %64 = vector.broadcast %17 : vector<1x4xf32> to vector<16x4xf32>
    %65 = arith.addf %63, %64 : vector<16x4xf32>
    %66 = arith.addf %4, %65 : vector<16x4xf32>
    %cst_24 = arith.constant dense<0.000000e+00> : vector<16xf32>
    %67 = vector.multi_reduction <add>, %66, %cst_24 [1] : vector<16x4xf32> to vector<16xf32>
    %68 = vector.shape_cast %67 : vector<16xf32> to vector<16x1xf32>
    %cst_25 = arith.constant 4.000000e+00 : f32
    %69 = vector.broadcast %cst_25 : f32 to vector<16x1xf32>
    %70 = arith.divf %68, %69 : vector<16x1xf32>
    %71 = vector.broadcast %70 : vector<16x1xf32> to vector<16x4xf32>
    %72 = arith.subf %66, %71 : vector<16x4xf32>
    %73 = arith.mulf %72, %72 : vector<16x4xf32>
    %cst_26 = arith.constant dense<0.000000e+00> : vector<16xf32>
    %74 = vector.multi_reduction <add>, %73, %cst_26 [1] : vector<16x4xf32> to vector<16xf32>
    %75 = vector.shape_cast %74 : vector<16xf32> to vector<16x1xf32>
    %cst_27 = arith.constant 4.000000e+00 : f32
    %76 = vector.broadcast %cst_27 : f32 to vector<16x1xf32>
    %77 = arith.divf %75, %76 : vector<16x1xf32>
    %78 = vector.broadcast %70 : vector<16x1xf32> to vector<16x4xf32>
    %79 = arith.subf %66, %78 : vector<16x4xf32>
    %cst_28 = arith.constant 9.99999974E-6 : f32
    %80 = vector.broadcast %cst_28 : f32 to vector<16x1xf32>
    %81 = arith.addf %77, %80 : vector<16x1xf32>
    %82 = math.rsqrt %81 : vector<16x1xf32>
    %83 = vector.broadcast %82 : vector<16x1xf32> to vector<16x4xf32>
    %84 = arith.mulf %79, %83 : vector<16x4xf32>
    %85 = vector.broadcast %19 : vector<1x4xf32> to vector<16x4xf32>
    %86 = arith.mulf %84, %85 : vector<16x4xf32>
    %87 = vector.broadcast %20 : vector<1x4xf32> to vector<16x4xf32>
    %88 = arith.addf %86, %87 : vector<16x4xf32>
    %cst_29 = arith.constant dense<0.000000e+00> : vector<16x32xf32>
    %89 = tpu.matmul %88, %12, %cst_29 {dimension_numbers = #tpu.dot_dimension_numbers<[1], [0], [0], [1], [0, 0, 1, 1], [], []>} : vector<16x4xf32>, vector<4x32xf32>, vector<16x32xf32> -> vector<16x32xf32>
    %90 = vector.broadcast %16 : vector<1x32xf32> to vector<16x32xf32>
    %91 = arith.addf %89, %90 : vector<16x32xf32>
    %cst_30 = arith.constant 0.000000e+00 : f32
    %92 = vector.broadcast %cst_30 : f32 to vector<16x32xf32>
    %93 = arith.maximumf %91, %92 : vector<16x32xf32>
    %cst_31 = arith.constant dense<0.000000e+00> : vector<16x4xf32>
    %94 = tpu.matmul %93, %14, %cst_31 {dimension_numbers = #tpu.dot_dimension_numbers<[1], [0], [0], [1], [0, 0, 1, 1], [], []>} : vector<16x32xf32>, vector<32x4xf32>, vector<16x4xf32> -> vector<16x4xf32>
    %95 = vector.broadcast %18 : vector<1x4xf32> to vector<16x4xf32>
    %96 = arith.addf %94, %95 : vector<16x4xf32>
    %97 = arith.addf %88, %96 : vector<16x4xf32>
    %cst_32 = arith.constant dense<0.000000e+00> : vector<16xf32>
    %98 = vector.multi_reduction <add>, %97, %cst_32 [1] : vector<16x4xf32> to vector<16xf32>
    %99 = vector.shape_cast %98 : vector<16xf32> to vector<16x1xf32>
    %cst_33 = arith.constant 4.000000e+00 : f32
    %100 = vector.broadcast %cst_33 : f32 to vector<16x1xf32>
    %101 = arith.divf %99, %100 : vector<16x1xf32>
    %102 = vector.broadcast %101 : vector<16x1xf32> to vector<16x4xf32>
    %103 = arith.subf %97, %102 : vector<16x4xf32>
    %104 = arith.mulf %103, %103 : vector<16x4xf32>
    %cst_34 = arith.constant dense<0.000000e+00> : vector<16xf32>
    %105 = vector.multi_reduction <add>, %104, %cst_34 [1] : vector<16x4xf32> to vector<16xf32>
    %106 = vector.shape_cast %105 : vector<16xf32> to vector<16x1xf32>
    %cst_35 = arith.constant 4.000000e+00 : f32
    %107 = vector.broadcast %cst_35 : f32 to vector<16x1xf32>
    %108 = arith.divf %106, %107 : vector<16x1xf32>
    %109 = vector.broadcast %101 : vector<16x1xf32> to vector<16x4xf32>
    %110 = arith.subf %97, %109 : vector<16x4xf32>
    %cst_36 = arith.constant 9.99999974E-6 : f32
    %111 = vector.broadcast %cst_36 : f32 to vector<16x1xf32>
    %112 = arith.addf %108, %111 : vector<16x1xf32>
    %113 = math.rsqrt %112 : vector<16x1xf32>
    %114 = vector.broadcast %113 : vector<16x1xf32> to vector<16x4xf32>
    %115 = arith.mulf %110, %114 : vector<16x4xf32>
    %116 = vector.broadcast %21 : vector<1x4xf32> to vector<16x4xf32>
    %117 = arith.mulf %115, %116 : vector<16x4xf32>
    %118 = vector.broadcast %22 : vector<1x4xf32> to vector<16x4xf32>
    %119 = arith.addf %117, %118 : vector<16x4xf32>
    %c1 = arith.constant 1 : index
    %c0_37 = arith.constant 0 : index
    %c0_38 = arith.constant 0 : index
    %120 = vector.load %arg4[%c1, %c0_37, %c0_38] : memref<2x4x44xf32, #tpu.memory_space<vmem>>, vector<1x4x44xf32>
    %121 = vector.shape_cast %120 : vector<1x4x44xf32> to vector<4x44xf32>
    %c1_39 = arith.constant 1 : index
    %c0_40 = arith.constant 0 : index
    %c0_41 = arith.constant 0 : index
    %122 = vector.load %arg5[%c1_39, %c0_40, %c0_41] : memref<2x36x4xf32, #tpu.memory_space<vmem>>, vector<1x36x4xf32>
    %123 = vector.shape_cast %122 : vector<1x36x4xf32> to vector<36x4xf32>
    %c1_42 = arith.constant 1 : index
    %c0_43 = arith.constant 0 : index
    %c0_44 = arith.constant 0 : index
    %124 = vector.load %arg6[%c1_42, %c0_43, %c0_44] : memref<2x8x32xf32, #tpu.memory_space<vmem>>, vector<1x8x32xf32>
    %125 = vector.shape_cast %124 : vector<1x8x32xf32> to vector<8x32xf32>
    %126 = vector.extract_strided_slice %121 {offsets = [0, 0], sizes = [4, 12], strides = [1, 1]} : vector<4x44xf32> to vector<4x12xf32>
    %127 = vector.extract_strided_slice %121 {offsets = [0, 12], sizes = [4, 32], strides = [1, 1]} : vector<4x44xf32> to vector<4x32xf32>
    %128 = vector.extract_strided_slice %123 {offsets = [0, 0], sizes = [4, 4], strides = [1, 1]} : vector<36x4xf32> to vector<4x4xf32>
    %129 = vector.extract_strided_slice %123 {offsets = [4, 0], sizes = [32, 4], strides = [1, 1]} : vector<36x4xf32> to vector<32x4xf32>
    %130 = vector.extract_strided_slice %125 {offsets = [0, 0], sizes = [1, 12], strides = [1, 1]} : vector<8x32xf32> to vector<1x12xf32>
    %131 = vector.extract_strided_slice %125 {offsets = [1, 0], sizes = [1, 32], strides = [1, 1]} : vector<8x32xf32> to vector<1x32xf32>
    %132 = vector.extract_strided_slice %125 {offsets = [2, 0], sizes = [1, 4], strides = [1, 1]} : vector<8x32xf32> to vector<1x4xf32>
    %133 = vector.extract_strided_slice %125 {offsets = [3, 0], sizes = [1, 4], strides = [1, 1]} : vector<8x32xf32> to vector<1x4xf32>
    %134 = vector.extract_strided_slice %125 {offsets = [4, 0], sizes = [1, 4], strides = [1, 1]} : vector<8x32xf32> to vector<1x4xf32>
    %135 = vector.extract_strided_slice %125 {offsets = [5, 0], sizes = [1, 4], strides = [1, 1]} : vector<8x32xf32> to vector<1x4xf32>
    %136 = vector.extract_strided_slice %125 {offsets = [6, 0], sizes = [1, 4], strides = [1, 1]} : vector<8x32xf32> to vector<1x4xf32>
    %137 = vector.extract_strided_slice %125 {offsets = [7, 0], sizes = [1, 4], strides = [1, 1]} : vector<8x32xf32> to vector<1x4xf32>
    %cst_45 = arith.constant dense<0.000000e+00> : vector<16x12xf32>
    %138 = tpu.matmul %119, %126, %cst_45 {dimension_numbers = #tpu.dot_dimension_numbers<[1], [0], [0], [1], [0, 0, 1, 1], [], []>} : vector<16x4xf32>, vector<4x12xf32>, vector<16x12xf32> -> vector<16x12xf32>
    %139 = vector.broadcast %130 : vector<1x12xf32> to vector<16x12xf32>
    %140 = arith.addf %138, %139 : vector<16x12xf32>
    %141 = vector.shape_cast %140 : vector<16x12xf32> to vector<2x8x12xf32>
    %142 = vector.extract_strided_slice %141 {offsets = [0, 0, 0], sizes = [2, 8, 2], strides = [1, 1, 1]} : vector<2x8x12xf32> to vector<2x8x2xf32>
    %143 = vector.extract_strided_slice %141 {offsets = [0, 0, 4], sizes = [2, 8, 2], strides = [1, 1, 1]} : vector<2x8x12xf32> to vector<2x8x2xf32>
    %144 = vector.extract_strided_slice %141 {offsets = [0, 0, 8], sizes = [2, 8, 2], strides = [1, 1, 1]} : vector<2x8x12xf32> to vector<2x8x2xf32>
    %cst_46 = arith.constant dense<0.000000e+00> : vector<2x8x8xf32>
    %145 = tpu.matmul %142, %143, %cst_46 {dimension_numbers = #tpu.dot_dimension_numbers<[2], [2], [1], [1], [0, 0, 0, 1, 1, 1], [0], [0]>} : vector<2x8x2xf32>, vector<2x8x2xf32>, vector<2x8x8xf32> -> vector<2x8x8xf32>
    %cst_47 = arith.constant dense<0xFF800000> : vector<2x8xf32>
    %146 = vector.multi_reduction <maximumf>, %145, %cst_47 [2] : vector<2x8x8xf32> to vector<2x8xf32>
    %147 = vector.shape_cast %146 : vector<2x8xf32> to vector<2x8x1xf32>
    %148 = vector.broadcast %147 : vector<2x8x1xf32> to vector<2x8x8xf32>
    %149 = arith.subf %145, %148 : vector<2x8x8xf32>
    %150 = math.exp %149 : vector<2x8x8xf32>
    %cst_48 = arith.constant dense<0.000000e+00> : vector<2x8xf32>
    %151 = vector.multi_reduction <add>, %150, %cst_48 [2] : vector<2x8x8xf32> to vector<2x8xf32>
    %152 = vector.shape_cast %151 : vector<2x8xf32> to vector<2x8x1xf32>
    %153 = tpu.reciprocal %152 {approx = true} : vector<2x8x1xf32> -> vector<2x8x1xf32>
    %154 = vector.broadcast %153 : vector<2x8x1xf32> to vector<2x8x8xf32>
    %155 = arith.mulf %150, %154 : vector<2x8x8xf32>
    %cst_49 = arith.constant dense<0.000000e+00> : vector<2x8x2xf32>
    %156 = tpu.matmul %155, %144, %cst_49 {dimension_numbers = #tpu.dot_dimension_numbers<[2], [1], [1], [2], [0, 0, 0, 1, 1, 2], [0], [0]>} : vector<2x8x8xf32>, vector<2x8x2xf32>, vector<2x8x2xf32> -> vector<2x8x2xf32>
    %157 = vector.shape_cast %156 : vector<2x8x2xf32> to vector<16x2xf32>
    %158 = vector.extract_strided_slice %128 {offsets = [0, 0], sizes = [2, 4], strides = [1, 1]} : vector<4x4xf32> to vector<2x4xf32>
    %cst_50 = arith.constant dense<0.000000e+00> : vector<16x4xf32>
    %159 = tpu.matmul %157, %158, %cst_50 {dimension_numbers = #tpu.dot_dimension_numbers<[1], [0], [0], [1], [0, 0, 1, 1], [], []>} : vector<16x2xf32>, vector<2x4xf32>, vector<16x4xf32> -> vector<16x4xf32>
    %160 = vector.extract_strided_slice %141 {offsets = [0, 0, 2], sizes = [2, 8, 2], strides = [1, 1, 1]} : vector<2x8x12xf32> to vector<2x8x2xf32>
    %161 = vector.extract_strided_slice %141 {offsets = [0, 0, 6], sizes = [2, 8, 2], strides = [1, 1, 1]} : vector<2x8x12xf32> to vector<2x8x2xf32>
    %162 = vector.extract_strided_slice %141 {offsets = [0, 0, 10], sizes = [2, 8, 2], strides = [1, 1, 1]} : vector<2x8x12xf32> to vector<2x8x2xf32>
    %cst_51 = arith.constant dense<0.000000e+00> : vector<2x8x8xf32>
    %163 = tpu.matmul %160, %161, %cst_51 {dimension_numbers = #tpu.dot_dimension_numbers<[2], [2], [1], [1], [0, 0, 0, 1, 1, 1], [0], [0]>} : vector<2x8x2xf32>, vector<2x8x2xf32>, vector<2x8x8xf32> -> vector<2x8x8xf32>
    %cst_52 = arith.constant dense<0xFF800000> : vector<2x8xf32>
    %164 = vector.multi_reduction <maximumf>, %163, %cst_52 [2] : vector<2x8x8xf32> to vector<2x8xf32>
    %165 = vector.shape_cast %164 : vector<2x8xf32> to vector<2x8x1xf32>
    %166 = vector.broadcast %165 : vector<2x8x1xf32> to vector<2x8x8xf32>
    %167 = arith.subf %163, %166 : vector<2x8x8xf32>
    %168 = math.exp %167 : vector<2x8x8xf32>
    %cst_53 = arith.constant dense<0.000000e+00> : vector<2x8xf32>
    %169 = vector.multi_reduction <add>, %168, %cst_53 [2] : vector<2x8x8xf32> to vector<2x8xf32>
    %170 = vector.shape_cast %169 : vector<2x8xf32> to vector<2x8x1xf32>
    %171 = tpu.reciprocal %170 {approx = true} : vector<2x8x1xf32> -> vector<2x8x1xf32>
    %172 = vector.broadcast %171 : vector<2x8x1xf32> to vector<2x8x8xf32>
    %173 = arith.mulf %168, %172 : vector<2x8x8xf32>
    %cst_54 = arith.constant dense<0.000000e+00> : vector<2x8x2xf32>
    %174 = tpu.matmul %173, %162, %cst_54 {dimension_numbers = #tpu.dot_dimension_numbers<[2], [1], [1], [2], [0, 0, 0, 1, 1, 2], [0], [0]>} : vector<2x8x8xf32>, vector<2x8x2xf32>, vector<2x8x2xf32> -> vector<2x8x2xf32>
    %175 = vector.shape_cast %174 : vector<2x8x2xf32> to vector<16x2xf32>
    %176 = vector.extract_strided_slice %128 {offsets = [2, 0], sizes = [2, 4], strides = [1, 1]} : vector<4x4xf32> to vector<2x4xf32>
    %cst_55 = arith.constant dense<0.000000e+00> : vector<16x4xf32>
    %177 = tpu.matmul %175, %176, %cst_55 {dimension_numbers = #tpu.dot_dimension_numbers<[1], [0], [0], [1], [0, 0, 1, 1], [], []>} : vector<16x2xf32>, vector<2x4xf32>, vector<16x4xf32> -> vector<16x4xf32>
    %178 = arith.addf %159, %177 : vector<16x4xf32>
    %179 = vector.broadcast %132 : vector<1x4xf32> to vector<16x4xf32>
    %180 = arith.addf %178, %179 : vector<16x4xf32>
    %181 = arith.addf %119, %180 : vector<16x4xf32>
    %cst_56 = arith.constant dense<0.000000e+00> : vector<16xf32>
    %182 = vector.multi_reduction <add>, %181, %cst_56 [1] : vector<16x4xf32> to vector<16xf32>
    %183 = vector.shape_cast %182 : vector<16xf32> to vector<16x1xf32>
    %cst_57 = arith.constant 4.000000e+00 : f32
    %184 = vector.broadcast %cst_57 : f32 to vector<16x1xf32>
    %185 = arith.divf %183, %184 : vector<16x1xf32>
    %186 = vector.broadcast %185 : vector<16x1xf32> to vector<16x4xf32>
    %187 = arith.subf %181, %186 : vector<16x4xf32>
    %188 = arith.mulf %187, %187 : vector<16x4xf32>
    %cst_58 = arith.constant dense<0.000000e+00> : vector<16xf32>
    %189 = vector.multi_reduction <add>, %188, %cst_58 [1] : vector<16x4xf32> to vector<16xf32>
    %190 = vector.shape_cast %189 : vector<16xf32> to vector<16x1xf32>
    %cst_59 = arith.constant 4.000000e+00 : f32
    %191 = vector.broadcast %cst_59 : f32 to vector<16x1xf32>
    %192 = arith.divf %190, %191 : vector<16x1xf32>
    %193 = vector.broadcast %185 : vector<16x1xf32> to vector<16x4xf32>
    %194 = arith.subf %181, %193 : vector<16x4xf32>
    %cst_60 = arith.constant 9.99999974E-6 : f32
    %195 = vector.broadcast %cst_60 : f32 to vector<16x1xf32>
    %196 = arith.addf %192, %195 : vector<16x1xf32>
    %197 = math.rsqrt %196 : vector<16x1xf32>
    %198 = vector.broadcast %197 : vector<16x1xf32> to vector<16x4xf32>
    %199 = arith.mulf %194, %198 : vector<16x4xf32>
    %200 = vector.broadcast %134 : vector<1x4xf32> to vector<16x4xf32>
    %201 = arith.mulf %199, %200 : vector<16x4xf32>
    %202 = vector.broadcast %135 : vector<1x4xf32> to vector<16x4xf32>
    %203 = arith.addf %201, %202 : vector<16x4xf32>
    %cst_61 = arith.constant dense<0.000000e+00> : vector<16x32xf32>
    %204 = tpu.matmul %203, %127, %cst_61 {dimension_numbers = #tpu.dot_dimension_numbers<[1], [0], [0], [1], [0, 0, 1, 1], [], []>} : vector<16x4xf32>, vector<4x32xf32>, vector<16x32xf32> -> vector<16x32xf32>
    %205 = vector.broadcast %131 : vector<1x32xf32> to vector<16x32xf32>
    %206 = arith.addf %204, %205 : vector<16x32xf32>
    %cst_62 = arith.constant 0.000000e+00 : f32
    %207 = vector.broadcast %cst_62 : f32 to vector<16x32xf32>
    %208 = arith.maximumf %206, %207 : vector<16x32xf32>
    %cst_63 = arith.constant dense<0.000000e+00> : vector<16x4xf32>
    %209 = tpu.matmul %208, %129, %cst_63 {dimension_numbers = #tpu.dot_dimension_numbers<[1], [0], [0], [1], [0, 0, 1, 1], [], []>} : vector<16x32xf32>, vector<32x4xf32>, vector<16x4xf32> -> vector<16x4xf32>
    %210 = vector.broadcast %133 : vector<1x4xf32> to vector<16x4xf32>
    %211 = arith.addf %209, %210 : vector<16x4xf32>
    %212 = arith.addf %203, %211 : vector<16x4xf32>
    %cst_64 = arith.constant dense<0.000000e+00> : vector<16xf32>
    %213 = vector.multi_reduction <add>, %212, %cst_64 [1] : vector<16x4xf32> to vector<16xf32>
    %214 = vector.shape_cast %213 : vector<16xf32> to vector<16x1xf32>
    %cst_65 = arith.constant 4.000000e+00 : f32
    %215 = vector.broadcast %cst_65 : f32 to vector<16x1xf32>
    %216 = arith.divf %214, %215 : vector<16x1xf32>
    %217 = vector.broadcast %216 : vector<16x1xf32> to vector<16x4xf32>
    %218 = arith.subf %212, %217 : vector<16x4xf32>
    %219 = arith.mulf %218, %218 : vector<16x4xf32>
    %cst_66 = arith.constant dense<0.000000e+00> : vector<16xf32>
    %220 = vector.multi_reduction <add>, %219, %cst_66 [1] : vector<16x4xf32> to vector<16xf32>
    %221 = vector.shape_cast %220 : vector<16xf32> to vector<16x1xf32>
    %cst_67 = arith.constant 4.000000e+00 : f32
    %222 = vector.broadcast %cst_67 : f32 to vector<16x1xf32>
    %223 = arith.divf %221, %222 : vector<16x1xf32>
    %224 = vector.broadcast %216 : vector<16x1xf32> to vector<16x4xf32>
    %225 = arith.subf %212, %224 : vector<16x4xf32>
    %cst_68 = arith.constant 9.99999974E-6 : f32
    %226 = vector.broadcast %cst_68 : f32 to vector<16x1xf32>
    %227 = arith.addf %223, %226 : vector<16x1xf32>
    %228 = math.rsqrt %227 : vector<16x1xf32>
    %229 = vector.broadcast %228 : vector<16x1xf32> to vector<16x4xf32>
    %230 = arith.mulf %225, %229 : vector<16x4xf32>
    %231 = vector.broadcast %136 : vector<1x4xf32> to vector<16x4xf32>
    %232 = arith.mulf %230, %231 : vector<16x4xf32>
    %233 = vector.broadcast %137 : vector<1x4xf32> to vector<16x4xf32>
    %234 = arith.addf %232, %233 : vector<16x4xf32>
    %235 = vector.shape_cast %234 : vector<16x4xf32> to vector<2x8x4xf32>
    %c0_69 = arith.constant 0 : index
    %c0_70 = arith.constant 0 : index
    %c0_71 = arith.constant 0 : index
    %236 = vector.load %arg1[%c0_69, %c0_70, %c0_71] : memref<1x8x4xf32, #tpu.memory_space<vmem>>, vector<1x8x4xf32>
    %c0_72 = arith.constant 0 : index
    %c0_73 = arith.constant 0 : index
    %c0_74 = arith.constant 0 : index
    %237 = vector.load %arg3[%c0_72, %c0_73, %c0_74] : memref<1x8x4xf32, #tpu.memory_space<vmem>>, vector<1x8x4xf32>
    %238 = arith.addf %236, %237 : vector<1x8x4xf32>
    %239 = vector.shape_cast %238 : vector<1x8x4xf32> to vector<8x4xf32>
    %c0_75 = arith.constant 0 : index
    %c0_76 = arith.constant 0 : index
    %c0_77 = arith.constant 0 : index
    %240 = vector.load %arg7[%c0_75, %c0_76, %c0_77] : memref<2x4x44xf32, #tpu.memory_space<vmem>>, vector<1x4x44xf32>
    %241 = vector.shape_cast %240 : vector<1x4x44xf32> to vector<4x44xf32>
    %c0_78 = arith.constant 0 : index
    %c0_79 = arith.constant 0 : index
    %c0_80 = arith.constant 0 : index
    %242 = vector.load %arg8[%c0_78, %c0_79, %c0_80] : memref<2x36x4xf32, #tpu.memory_space<vmem>>, vector<1x36x4xf32>
    %243 = vector.shape_cast %242 : vector<1x36x4xf32> to vector<36x4xf32>
    %c0_81 = arith.constant 0 : index
    %c0_82 = arith.constant 0 : index
    %c0_83 = arith.constant 0 : index
    %244 = vector.load %arg9[%c0_81, %c0_82, %c0_83] : memref<2x8x32xf32, #tpu.memory_space<vmem>>, vector<1x8x32xf32>
    %245 = vector.shape_cast %244 : vector<1x8x32xf32> to vector<8x32xf32>
    %246 = vector.extract_strided_slice %241 {offsets = [0, 0], sizes = [4, 12], strides = [1, 1]} : vector<4x44xf32> to vector<4x12xf32>
    %247 = vector.extract_strided_slice %241 {offsets = [0, 12], sizes = [4, 32], strides = [1, 1]} : vector<4x44xf32> to vector<4x32xf32>
    %248 = vector.extract_strided_slice %243 {offsets = [0, 0], sizes = [4, 4], strides = [1, 1]} : vector<36x4xf32> to vector<4x4xf32>
    %249 = vector.extract_strided_slice %243 {offsets = [4, 0], sizes = [32, 4], strides = [1, 1]} : vector<36x4xf32> to vector<32x4xf32>
    %250 = vector.extract_strided_slice %245 {offsets = [0, 0], sizes = [1, 12], strides = [1, 1]} : vector<8x32xf32> to vector<1x12xf32>
    %251 = vector.extract_strided_slice %245 {offsets = [1, 0], sizes = [1, 32], strides = [1, 1]} : vector<8x32xf32> to vector<1x32xf32>
    %252 = vector.extract_strided_slice %245 {offsets = [2, 0], sizes = [1, 4], strides = [1, 1]} : vector<8x32xf32> to vector<1x4xf32>
    %253 = vector.extract_strided_slice %245 {offsets = [3, 0], sizes = [1, 4], strides = [1, 1]} : vector<8x32xf32> to vector<1x4xf32>
    %254 = vector.extract_strided_slice %245 {offsets = [4, 0], sizes = [1, 4], strides = [1, 1]} : vector<8x32xf32> to vector<1x4xf32>
    %255 = vector.extract_strided_slice %245 {offsets = [5, 0], sizes = [1, 4], strides = [1, 1]} : vector<8x32xf32> to vector<1x4xf32>
    %256 = vector.extract_strided_slice %245 {offsets = [6, 0], sizes = [1, 4], strides = [1, 1]} : vector<8x32xf32> to vector<1x4xf32>
    %257 = vector.extract_strided_slice %245 {offsets = [7, 0], sizes = [1, 4], strides = [1, 1]} : vector<8x32xf32> to vector<1x4xf32>
    %cst_84 = arith.constant dense<0.000000e+00> : vector<8x12xf32>
    %258 = tpu.matmul %239, %246, %cst_84 {dimension_numbers = #tpu.dot_dimension_numbers<[1], [0], [0], [1], [0, 0, 1, 1], [], []>} : vector<8x4xf32>, vector<4x12xf32>, vector<8x12xf32> -> vector<8x12xf32>
    %259 = vector.broadcast %250 : vector<1x12xf32> to vector<8x12xf32>
    %260 = arith.addf %258, %259 : vector<8x12xf32>
    %261 = vector.shape_cast %260 : vector<8x12xf32> to vector<1x8x12xf32>
    %262 = vector.extract_strided_slice %261 {offsets = [0, 0, 0], sizes = [1, 8, 2], strides = [1, 1, 1]} : vector<1x8x12xf32> to vector<1x8x2xf32>
    %263 = vector.extract_strided_slice %261 {offsets = [0, 0, 4], sizes = [1, 8, 2], strides = [1, 1, 1]} : vector<1x8x12xf32> to vector<1x8x2xf32>
    %264 = vector.extract_strided_slice %261 {offsets = [0, 0, 8], sizes = [1, 8, 2], strides = [1, 1, 1]} : vector<1x8x12xf32> to vector<1x8x2xf32>
    %cst_85 = arith.constant dense<0.000000e+00> : vector<1x8x8xf32>
    %265 = tpu.matmul %262, %263, %cst_85 {dimension_numbers = #tpu.dot_dimension_numbers<[2], [2], [1], [1], [0, 0, 0, 1, 1, 1], [0], [0]>} : vector<1x8x2xf32>, vector<1x8x2xf32>, vector<1x8x8xf32> -> vector<1x8x8xf32>
    %cst_86 = arith.constant dense<0xFF800000> : vector<1x8xf32>
    %266 = vector.multi_reduction <maximumf>, %265, %cst_86 [2] : vector<1x8x8xf32> to vector<1x8xf32>
    %267 = vector.shape_cast %266 : vector<1x8xf32> to vector<1x8x1xf32>
    %268 = vector.broadcast %267 : vector<1x8x1xf32> to vector<1x8x8xf32>
    %269 = arith.subf %265, %268 : vector<1x8x8xf32>
    %270 = math.exp %269 : vector<1x8x8xf32>
    %cst_87 = arith.constant dense<0.000000e+00> : vector<1x8xf32>
    %271 = vector.multi_reduction <add>, %270, %cst_87 [2] : vector<1x8x8xf32> to vector<1x8xf32>
    %272 = vector.shape_cast %271 : vector<1x8xf32> to vector<1x8x1xf32>
    %273 = tpu.reciprocal %272 {approx = true} : vector<1x8x1xf32> -> vector<1x8x1xf32>
    %274 = vector.broadcast %273 : vector<1x8x1xf32> to vector<1x8x8xf32>
    %275 = arith.mulf %270, %274 : vector<1x8x8xf32>
    %cst_88 = arith.constant dense<0.000000e+00> : vector<1x8x2xf32>
    %276 = tpu.matmul %275, %264, %cst_88 {dimension_numbers = #tpu.dot_dimension_numbers<[2], [1], [1], [2], [0, 0, 0, 1, 1, 2], [0], [0]>} : vector<1x8x8xf32>, vector<1x8x2xf32>, vector<1x8x2xf32> -> vector<1x8x2xf32>
    %277 = vector.shape_cast %276 : vector<1x8x2xf32> to vector<8x2xf32>
    %278 = vector.extract_strided_slice %248 {offsets = [0, 0], sizes = [2, 4], strides = [1, 1]} : vector<4x4xf32> to vector<2x4xf32>
    %cst_89 = arith.constant dense<0.000000e+00> : vector<8x4xf32>
    %279 = tpu.matmul %277, %278, %cst_89 {dimension_numbers = #tpu.dot_dimension_numbers<[1], [0], [0], [1], [0, 0, 1, 1], [], []>} : vector<8x2xf32>, vector<2x4xf32>, vector<8x4xf32> -> vector<8x4xf32>
    %280 = vector.extract_strided_slice %261 {offsets = [0, 0, 2], sizes = [1, 8, 2], strides = [1, 1, 1]} : vector<1x8x12xf32> to vector<1x8x2xf32>
    %281 = vector.extract_strided_slice %261 {offsets = [0, 0, 6], sizes = [1, 8, 2], strides = [1, 1, 1]} : vector<1x8x12xf32> to vector<1x8x2xf32>
    %282 = vector.extract_strided_slice %261 {offsets = [0, 0, 10], sizes = [1, 8, 2], strides = [1, 1, 1]} : vector<1x8x12xf32> to vector<1x8x2xf32>
    %cst_90 = arith.constant dense<0.000000e+00> : vector<1x8x8xf32>
    %283 = tpu.matmul %280, %281, %cst_90 {dimension_numbers = #tpu.dot_dimension_numbers<[2], [2], [1], [1], [0, 0, 0, 1, 1, 1], [0], [0]>} : vector<1x8x2xf32>, vector<1x8x2xf32>, vector<1x8x8xf32> -> vector<1x8x8xf32>
    %cst_91 = arith.constant dense<0xFF800000> : vector<1x8xf32>
    %284 = vector.multi_reduction <maximumf>, %283, %cst_91 [2] : vector<1x8x8xf32> to vector<1x8xf32>
    %285 = vector.shape_cast %284 : vector<1x8xf32> to vector<1x8x1xf32>
    %286 = vector.broadcast %285 : vector<1x8x1xf32> to vector<1x8x8xf32>
    %287 = arith.subf %283, %286 : vector<1x8x8xf32>
    %288 = math.exp %287 : vector<1x8x8xf32>
    %cst_92 = arith.constant dense<0.000000e+00> : vector<1x8xf32>
    %289 = vector.multi_reduction <add>, %288, %cst_92 [2] : vector<1x8x8xf32> to vector<1x8xf32>
    %290 = vector.shape_cast %289 : vector<1x8xf32> to vector<1x8x1xf32>
    %291 = tpu.reciprocal %290 {approx = true} : vector<1x8x1xf32> -> vector<1x8x1xf32>
    %292 = vector.broadcast %291 : vector<1x8x1xf32> to vector<1x8x8xf32>
    %293 = arith.mulf %288, %292 : vector<1x8x8xf32>
    %cst_93 = arith.constant dense<0.000000e+00> : vector<1x8x2xf32>
    %294 = tpu.matmul %293, %282, %cst_93 {dimension_numbers = #tpu.dot_dimension_numbers<[2], [1], [1], [2], [0, 0, 0, 1, 1, 2], [0], [0]>} : vector<1x8x8xf32>, vector<1x8x2xf32>, vector<1x8x2xf32> -> vector<1x8x2xf32>
    %295 = vector.shape_cast %294 : vector<1x8x2xf32> to vector<8x2xf32>
    %296 = vector.extract_strided_slice %248 {offsets = [2, 0], sizes = [2, 4], strides = [1, 1]} : vector<4x4xf32> to vector<2x4xf32>
    %cst_94 = arith.constant dense<0.000000e+00> : vector<8x4xf32>
    %297 = tpu.matmul %295, %296, %cst_94 {dimension_numbers = #tpu.dot_dimension_numbers<[1], [0], [0], [1], [0, 0, 1, 1], [], []>} : vector<8x2xf32>, vector<2x4xf32>, vector<8x4xf32> -> vector<8x4xf32>
    %298 = arith.addf %279, %297 : vector<8x4xf32>
    %299 = vector.broadcast %252 : vector<1x4xf32> to vector<8x4xf32>
    %300 = arith.addf %298, %299 : vector<8x4xf32>
    %301 = arith.addf %239, %300 : vector<8x4xf32>
    %cst_95 = arith.constant dense<0.000000e+00> : vector<8xf32>
    %302 = vector.multi_reduction <add>, %301, %cst_95 [1] : vector<8x4xf32> to vector<8xf32>
    %303 = vector.shape_cast %302 : vector<8xf32> to vector<8x1xf32>
    %cst_96 = arith.constant 4.000000e+00 : f32
    %304 = vector.broadcast %cst_96 : f32 to vector<8x1xf32>
    %305 = arith.divf %303, %304 : vector<8x1xf32>
    %306 = vector.broadcast %305 : vector<8x1xf32> to vector<8x4xf32>
    %307 = arith.subf %301, %306 : vector<8x4xf32>
    %308 = arith.mulf %307, %307 : vector<8x4xf32>
    %cst_97 = arith.constant dense<0.000000e+00> : vector<8xf32>
    %309 = vector.multi_reduction <add>, %308, %cst_97 [1] : vector<8x4xf32> to vector<8xf32>
    %310 = vector.shape_cast %309 : vector<8xf32> to vector<8x1xf32>
    %cst_98 = arith.constant 4.000000e+00 : f32
    %311 = vector.broadcast %cst_98 : f32 to vector<8x1xf32>
    %312 = arith.divf %310, %311 : vector<8x1xf32>
    %313 = vector.broadcast %305 : vector<8x1xf32> to vector<8x4xf32>
    %314 = arith.subf %301, %313 : vector<8x4xf32>
    %cst_99 = arith.constant 9.99999974E-6 : f32
    %315 = vector.broadcast %cst_99 : f32 to vector<8x1xf32>
    %316 = arith.addf %312, %315 : vector<8x1xf32>
    %317 = math.rsqrt %316 : vector<8x1xf32>
    %318 = vector.broadcast %317 : vector<8x1xf32> to vector<8x4xf32>
    %319 = arith.mulf %314, %318 : vector<8x4xf32>
    %320 = vector.broadcast %254 : vector<1x4xf32> to vector<8x4xf32>
    %321 = arith.mulf %319, %320 : vector<8x4xf32>
    %322 = vector.broadcast %255 : vector<1x4xf32> to vector<8x4xf32>
    %323 = arith.addf %321, %322 : vector<8x4xf32>
    %cst_100 = arith.constant dense<0.000000e+00> : vector<8x32xf32>
    %324 = tpu.matmul %323, %247, %cst_100 {dimension_numbers = #tpu.dot_dimension_numbers<[1], [0], [0], [1], [0, 0, 1, 1], [], []>} : vector<8x4xf32>, vector<4x32xf32>, vector<8x32xf32> -> vector<8x32xf32>
    %325 = vector.broadcast %251 : vector<1x32xf32> to vector<8x32xf32>
    %326 = arith.addf %324, %325 : vector<8x32xf32>
    %cst_101 = arith.constant 0.000000e+00 : f32
    %327 = vector.broadcast %cst_101 : f32 to vector<8x32xf32>
    %328 = arith.maximumf %326, %327 : vector<8x32xf32>
    %cst_102 = arith.constant dense<0.000000e+00> : vector<8x4xf32>
    %329 = tpu.matmul %328, %249, %cst_102 {dimension_numbers = #tpu.dot_dimension_numbers<[1], [0], [0], [1], [0, 0, 1, 1], [], []>} : vector<8x32xf32>, vector<32x4xf32>, vector<8x4xf32> -> vector<8x4xf32>
    %330 = vector.broadcast %253 : vector<1x4xf32> to vector<8x4xf32>
    %331 = arith.addf %329, %330 : vector<8x4xf32>
    %332 = arith.addf %323, %331 : vector<8x4xf32>
    %cst_103 = arith.constant dense<0.000000e+00> : vector<8xf32>
    %333 = vector.multi_reduction <add>, %332, %cst_103 [1] : vector<8x4xf32> to vector<8xf32>
    %334 = vector.shape_cast %333 : vector<8xf32> to vector<8x1xf32>
    %cst_104 = arith.constant 4.000000e+00 : f32
    %335 = vector.broadcast %cst_104 : f32 to vector<8x1xf32>
    %336 = arith.divf %334, %335 : vector<8x1xf32>
    %337 = vector.broadcast %336 : vector<8x1xf32> to vector<8x4xf32>
    %338 = arith.subf %332, %337 : vector<8x4xf32>
    %339 = arith.mulf %338, %338 : vector<8x4xf32>
    %cst_105 = arith.constant dense<0.000000e+00> : vector<8xf32>
    %340 = vector.multi_reduction <add>, %339, %cst_105 [1] : vector<8x4xf32> to vector<8xf32>
    %341 = vector.shape_cast %340 : vector<8xf32> to vector<8x1xf32>
    %cst_106 = arith.constant 4.000000e+00 : f32
    %342 = vector.broadcast %cst_106 : f32 to vector<8x1xf32>
    %343 = arith.divf %341, %342 : vector<8x1xf32>
    %344 = vector.broadcast %336 : vector<8x1xf32> to vector<8x4xf32>
    %345 = arith.subf %332, %344 : vector<8x4xf32>
    %cst_107 = arith.constant 9.99999974E-6 : f32
    %346 = vector.broadcast %cst_107 : f32 to vector<8x1xf32>
    %347 = arith.addf %343, %346 : vector<8x1xf32>
    %348 = math.rsqrt %347 : vector<8x1xf32>
    %349 = vector.broadcast %348 : vector<8x1xf32> to vector<8x4xf32>
    %350 = arith.mulf %345, %349 : vector<8x4xf32>
    %351 = vector.broadcast %256 : vector<1x4xf32> to vector<8x4xf32>
    %352 = arith.mulf %350, %351 : vector<8x4xf32>
    %353 = vector.broadcast %257 : vector<1x4xf32> to vector<8x4xf32>
    %354 = arith.addf %352, %353 : vector<8x4xf32>
    %c1_108 = arith.constant 1 : index
    %c0_109 = arith.constant 0 : index
    %c0_110 = arith.constant 0 : index
    %355 = vector.load %arg7[%c1_108, %c0_109, %c0_110] : memref<2x4x44xf32, #tpu.memory_space<vmem>>, vector<1x4x44xf32>
    %356 = vector.shape_cast %355 : vector<1x4x44xf32> to vector<4x44xf32>
    %c1_111 = arith.constant 1 : index
    %c0_112 = arith.constant 0 : index
    %c0_113 = arith.constant 0 : index
    %357 = vector.load %arg8[%c1_111, %c0_112, %c0_113] : memref<2x36x4xf32, #tpu.memory_space<vmem>>, vector<1x36x4xf32>
    %358 = vector.shape_cast %357 : vector<1x36x4xf32> to vector<36x4xf32>
    %c1_114 = arith.constant 1 : index
    %c0_115 = arith.constant 0 : index
    %c0_116 = arith.constant 0 : index
    %359 = vector.load %arg9[%c1_114, %c0_115, %c0_116] : memref<2x8x32xf32, #tpu.memory_space<vmem>>, vector<1x8x32xf32>
    %360 = vector.shape_cast %359 : vector<1x8x32xf32> to vector<8x32xf32>
    %361 = vector.extract_strided_slice %356 {offsets = [0, 0], sizes = [4, 12], strides = [1, 1]} : vector<4x44xf32> to vector<4x12xf32>
    %362 = vector.extract_strided_slice %356 {offsets = [0, 12], sizes = [4, 32], strides = [1, 1]} : vector<4x44xf32> to vector<4x32xf32>
    %363 = vector.extract_strided_slice %358 {offsets = [0, 0], sizes = [4, 4], strides = [1, 1]} : vector<36x4xf32> to vector<4x4xf32>
    %364 = vector.extract_strided_slice %358 {offsets = [4, 0], sizes = [32, 4], strides = [1, 1]} : vector<36x4xf32> to vector<32x4xf32>
    %365 = vector.extract_strided_slice %360 {offsets = [0, 0], sizes = [1, 12], strides = [1, 1]} : vector<8x32xf32> to vector<1x12xf32>
    %366 = vector.extract_strided_slice %360 {offsets = [1, 0], sizes = [1, 32], strides = [1, 1]} : vector<8x32xf32> to vector<1x32xf32>
    %367 = vector.extract_strided_slice %360 {offsets = [2, 0], sizes = [1, 4], strides = [1, 1]} : vector<8x32xf32> to vector<1x4xf32>
    %368 = vector.extract_strided_slice %360 {offsets = [3, 0], sizes = [1, 4], strides = [1, 1]} : vector<8x32xf32> to vector<1x4xf32>
    %369 = vector.extract_strided_slice %360 {offsets = [4, 0], sizes = [1, 4], strides = [1, 1]} : vector<8x32xf32> to vector<1x4xf32>
    %370 = vector.extract_strided_slice %360 {offsets = [5, 0], sizes = [1, 4], strides = [1, 1]} : vector<8x32xf32> to vector<1x4xf32>
    %371 = vector.extract_strided_slice %360 {offsets = [6, 0], sizes = [1, 4], strides = [1, 1]} : vector<8x32xf32> to vector<1x4xf32>
    %372 = vector.extract_strided_slice %360 {offsets = [7, 0], sizes = [1, 4], strides = [1, 1]} : vector<8x32xf32> to vector<1x4xf32>
    %cst_117 = arith.constant dense<0.000000e+00> : vector<8x12xf32>
    %373 = tpu.matmul %354, %361, %cst_117 {dimension_numbers = #tpu.dot_dimension_numbers<[1], [0], [0], [1], [0, 0, 1, 1], [], []>} : vector<8x4xf32>, vector<4x12xf32>, vector<8x12xf32> -> vector<8x12xf32>
    %374 = vector.broadcast %365 : vector<1x12xf32> to vector<8x12xf32>
    %375 = arith.addf %373, %374 : vector<8x12xf32>
    %376 = vector.shape_cast %375 : vector<8x12xf32> to vector<1x8x12xf32>
    %377 = vector.extract_strided_slice %376 {offsets = [0, 0, 0], sizes = [1, 8, 2], strides = [1, 1, 1]} : vector<1x8x12xf32> to vector<1x8x2xf32>
    %378 = vector.extract_strided_slice %376 {offsets = [0, 0, 4], sizes = [1, 8, 2], strides = [1, 1, 1]} : vector<1x8x12xf32> to vector<1x8x2xf32>
    %379 = vector.extract_strided_slice %376 {offsets = [0, 0, 8], sizes = [1, 8, 2], strides = [1, 1, 1]} : vector<1x8x12xf32> to vector<1x8x2xf32>
    %cst_118 = arith.constant dense<0.000000e+00> : vector<1x8x8xf32>
    %380 = tpu.matmul %377, %378, %cst_118 {dimension_numbers = #tpu.dot_dimension_numbers<[2], [2], [1], [1], [0, 0, 0, 1, 1, 1], [0], [0]>} : vector<1x8x2xf32>, vector<1x8x2xf32>, vector<1x8x8xf32> -> vector<1x8x8xf32>
    %cst_119 = arith.constant dense<0xFF800000> : vector<1x8xf32>
    %381 = vector.multi_reduction <maximumf>, %380, %cst_119 [2] : vector<1x8x8xf32> to vector<1x8xf32>
    %382 = vector.shape_cast %381 : vector<1x8xf32> to vector<1x8x1xf32>
    %383 = vector.broadcast %382 : vector<1x8x1xf32> to vector<1x8x8xf32>
    %384 = arith.subf %380, %383 : vector<1x8x8xf32>
    %385 = math.exp %384 : vector<1x8x8xf32>
    %cst_120 = arith.constant dense<0.000000e+00> : vector<1x8xf32>
    %386 = vector.multi_reduction <add>, %385, %cst_120 [2] : vector<1x8x8xf32> to vector<1x8xf32>
    %387 = vector.shape_cast %386 : vector<1x8xf32> to vector<1x8x1xf32>
    %388 = tpu.reciprocal %387 {approx = true} : vector<1x8x1xf32> -> vector<1x8x1xf32>
    %389 = vector.broadcast %388 : vector<1x8x1xf32> to vector<1x8x8xf32>
    %390 = arith.mulf %385, %389 : vector<1x8x8xf32>
    %cst_121 = arith.constant dense<0.000000e+00> : vector<1x8x2xf32>
    %391 = tpu.matmul %390, %379, %cst_121 {dimension_numbers = #tpu.dot_dimension_numbers<[2], [1], [1], [2], [0, 0, 0, 1, 1, 2], [0], [0]>} : vector<1x8x8xf32>, vector<1x8x2xf32>, vector<1x8x2xf32> -> vector<1x8x2xf32>
    %392 = vector.shape_cast %391 : vector<1x8x2xf32> to vector<8x2xf32>
    %393 = vector.extract_strided_slice %363 {offsets = [0, 0], sizes = [2, 4], strides = [1, 1]} : vector<4x4xf32> to vector<2x4xf32>
    %cst_122 = arith.constant dense<0.000000e+00> : vector<8x4xf32>
    %394 = tpu.matmul %392, %393, %cst_122 {dimension_numbers = #tpu.dot_dimension_numbers<[1], [0], [0], [1], [0, 0, 1, 1], [], []>} : vector<8x2xf32>, vector<2x4xf32>, vector<8x4xf32> -> vector<8x4xf32>
    %395 = vector.extract_strided_slice %376 {offsets = [0, 0, 2], sizes = [1, 8, 2], strides = [1, 1, 1]} : vector<1x8x12xf32> to vector<1x8x2xf32>
    %396 = vector.extract_strided_slice %376 {offsets = [0, 0, 6], sizes = [1, 8, 2], strides = [1, 1, 1]} : vector<1x8x12xf32> to vector<1x8x2xf32>
    %397 = vector.extract_strided_slice %376 {offsets = [0, 0, 10], sizes = [1, 8, 2], strides = [1, 1, 1]} : vector<1x8x12xf32> to vector<1x8x2xf32>
    %cst_123 = arith.constant dense<0.000000e+00> : vector<1x8x8xf32>
    %398 = tpu.matmul %395, %396, %cst_123 {dimension_numbers = #tpu.dot_dimension_numbers<[2], [2], [1], [1], [0, 0, 0, 1, 1, 1], [0], [0]>} : vector<1x8x2xf32>, vector<1x8x2xf32>, vector<1x8x8xf32> -> vector<1x8x8xf32>
    %cst_124 = arith.constant dense<0xFF800000> : vector<1x8xf32>
    %399 = vector.multi_reduction <maximumf>, %398, %cst_124 [2] : vector<1x8x8xf32> to vector<1x8xf32>
    %400 = vector.shape_cast %399 : vector<1x8xf32> to vector<1x8x1xf32>
    %401 = vector.broadcast %400 : vector<1x8x1xf32> to vector<1x8x8xf32>
    %402 = arith.subf %398, %401 : vector<1x8x8xf32>
    %403 = math.exp %402 : vector<1x8x8xf32>
    %cst_125 = arith.constant dense<0.000000e+00> : vector<1x8xf32>
    %404 = vector.multi_reduction <add>, %403, %cst_125 [2] : vector<1x8x8xf32> to vector<1x8xf32>
    %405 = vector.shape_cast %404 : vector<1x8xf32> to vector<1x8x1xf32>
    %406 = tpu.reciprocal %405 {approx = true} : vector<1x8x1xf32> -> vector<1x8x1xf32>
    %407 = vector.broadcast %406 : vector<1x8x1xf32> to vector<1x8x8xf32>
    %408 = arith.mulf %403, %407 : vector<1x8x8xf32>
    %cst_126 = arith.constant dense<0.000000e+00> : vector<1x8x2xf32>
    %409 = tpu.matmul %408, %397, %cst_126 {dimension_numbers = #tpu.dot_dimension_numbers<[2], [1], [1], [2], [0, 0, 0, 1, 1, 2], [0], [0]>} : vector<1x8x8xf32>, vector<1x8x2xf32>, vector<1x8x2xf32> -> vector<1x8x2xf32>
    %410 = vector.shape_cast %409 : vector<1x8x2xf32> to vector<8x2xf32>
    %411 = vector.extract_strided_slice %363 {offsets = [2, 0], sizes = [2, 4], strides = [1, 1]} : vector<4x4xf32> to vector<2x4xf32>
    %cst_127 = arith.constant dense<0.000000e+00> : vector<8x4xf32>
    %412 = tpu.matmul %410, %411, %cst_127 {dimension_numbers = #tpu.dot_dimension_numbers<[1], [0], [0], [1], [0, 0, 1, 1], [], []>} : vector<8x2xf32>, vector<2x4xf32>, vector<8x4xf32> -> vector<8x4xf32>
    %413 = arith.addf %394, %412 : vector<8x4xf32>
    %414 = vector.broadcast %367 : vector<1x4xf32> to vector<8x4xf32>
    %415 = arith.addf %413, %414 : vector<8x4xf32>
    %416 = arith.addf %354, %415 : vector<8x4xf32>
    %cst_128 = arith.constant dense<0.000000e+00> : vector<8xf32>
    %417 = vector.multi_reduction <add>, %416, %cst_128 [1] : vector<8x4xf32> to vector<8xf32>
    %418 = vector.shape_cast %417 : vector<8xf32> to vector<8x1xf32>
    %cst_129 = arith.constant 4.000000e+00 : f32
    %419 = vector.broadcast %cst_129 : f32 to vector<8x1xf32>
    %420 = arith.divf %418, %419 : vector<8x1xf32>
    %421 = vector.broadcast %420 : vector<8x1xf32> to vector<8x4xf32>
    %422 = arith.subf %416, %421 : vector<8x4xf32>
    %423 = arith.mulf %422, %422 : vector<8x4xf32>
    %cst_130 = arith.constant dense<0.000000e+00> : vector<8xf32>
    %424 = vector.multi_reduction <add>, %423, %cst_130 [1] : vector<8x4xf32> to vector<8xf32>
    %425 = vector.shape_cast %424 : vector<8xf32> to vector<8x1xf32>
    %cst_131 = arith.constant 4.000000e+00 : f32
    %426 = vector.broadcast %cst_131 : f32 to vector<8x1xf32>
    %427 = arith.divf %425, %426 : vector<8x1xf32>
    %428 = vector.broadcast %420 : vector<8x1xf32> to vector<8x4xf32>
    %429 = arith.subf %416, %428 : vector<8x4xf32>
    %cst_132 = arith.constant 9.99999974E-6 : f32
    %430 = vector.broadcast %cst_132 : f32 to vector<8x1xf32>
    %431 = arith.addf %427, %430 : vector<8x1xf32>
    %432 = math.rsqrt %431 : vector<8x1xf32>
    %433 = vector.broadcast %432 : vector<8x1xf32> to vector<8x4xf32>
    %434 = arith.mulf %429, %433 : vector<8x4xf32>
    %435 = vector.broadcast %369 : vector<1x4xf32> to vector<8x4xf32>
    %436 = arith.mulf %434, %435 : vector<8x4xf32>
    %437 = vector.broadcast %370 : vector<1x4xf32> to vector<8x4xf32>
    %438 = arith.addf %436, %437 : vector<8x4xf32>
    %cst_133 = arith.constant dense<0.000000e+00> : vector<8x32xf32>
    %439 = tpu.matmul %438, %362, %cst_133 {dimension_numbers = #tpu.dot_dimension_numbers<[1], [0], [0], [1], [0, 0, 1, 1], [], []>} : vector<8x4xf32>, vector<4x32xf32>, vector<8x32xf32> -> vector<8x32xf32>
    %440 = vector.broadcast %366 : vector<1x32xf32> to vector<8x32xf32>
    %441 = arith.addf %439, %440 : vector<8x32xf32>
    %cst_134 = arith.constant 0.000000e+00 : f32
    %442 = vector.broadcast %cst_134 : f32 to vector<8x32xf32>
    %443 = arith.maximumf %441, %442 : vector<8x32xf32>
    %cst_135 = arith.constant dense<0.000000e+00> : vector<8x4xf32>
    %444 = tpu.matmul %443, %364, %cst_135 {dimension_numbers = #tpu.dot_dimension_numbers<[1], [0], [0], [1], [0, 0, 1, 1], [], []>} : vector<8x32xf32>, vector<32x4xf32>, vector<8x4xf32> -> vector<8x4xf32>
    %445 = vector.broadcast %368 : vector<1x4xf32> to vector<8x4xf32>
    %446 = arith.addf %444, %445 : vector<8x4xf32>
    %447 = arith.addf %438, %446 : vector<8x4xf32>
    %cst_136 = arith.constant dense<0.000000e+00> : vector<8xf32>
    %448 = vector.multi_reduction <add>, %447, %cst_136 [1] : vector<8x4xf32> to vector<8xf32>
    %449 = vector.shape_cast %448 : vector<8xf32> to vector<8x1xf32>
    %cst_137 = arith.constant 4.000000e+00 : f32
    %450 = vector.broadcast %cst_137 : f32 to vector<8x1xf32>
    %451 = arith.divf %449, %450 : vector<8x1xf32>
    %452 = vector.broadcast %451 : vector<8x1xf32> to vector<8x4xf32>
    %453 = arith.subf %447, %452 : vector<8x4xf32>
    %454 = arith.mulf %453, %453 : vector<8x4xf32>
    %cst_138 = arith.constant dense<0.000000e+00> : vector<8xf32>
    %455 = vector.multi_reduction <add>, %454, %cst_138 [1] : vector<8x4xf32> to vector<8xf32>
    %456 = vector.shape_cast %455 : vector<8xf32> to vector<8x1xf32>
    %cst_139 = arith.constant 4.000000e+00 : f32
    %457 = vector.broadcast %cst_139 : f32 to vector<8x1xf32>
    %458 = arith.divf %456, %457 : vector<8x1xf32>
    %459 = vector.broadcast %451 : vector<8x1xf32> to vector<8x4xf32>
    %460 = arith.subf %447, %459 : vector<8x4xf32>
    %cst_140 = arith.constant 9.99999974E-6 : f32
    %461 = vector.broadcast %cst_140 : f32 to vector<8x1xf32>
    %462 = arith.addf %458, %461 : vector<8x1xf32>
    %463 = math.rsqrt %462 : vector<8x1xf32>
    %464 = vector.broadcast %463 : vector<8x1xf32> to vector<8x4xf32>
    %465 = arith.mulf %460, %464 : vector<8x4xf32>
    %466 = vector.broadcast %371 : vector<1x4xf32> to vector<8x4xf32>
    %467 = arith.mulf %465, %466 : vector<8x4xf32>
    %468 = vector.broadcast %372 : vector<1x4xf32> to vector<8x4xf32>
    %469 = arith.addf %467, %468 : vector<8x4xf32>
    %470 = vector.shape_cast %469 : vector<8x4xf32> to vector<1x8x4xf32>
    %471 = vector.extract_strided_slice %235 {offsets = [0, 7, 0], sizes = [2, 1, 4], strides = [1, 1, 1]} : vector<2x8x4xf32> to vector<2x1x4xf32>
    %472 = vector.shape_cast %471 : vector<2x1x4xf32> to vector<2x4xf32>
    %473 = vector.extract_strided_slice %470 {offsets = [0, 7, 0], sizes = [1, 1, 4], strides = [1, 1, 1]} : vector<1x8x4xf32> to vector<1x1x4xf32>
    %474 = vector.shape_cast %473 : vector<1x1x4xf32> to vector<1x4xf32>
    %475 = vector.shape_cast %474 : vector<1x4xf32> to vector<1x4xf32>
    %476 = vector.broadcast %475 : vector<1x4xf32> to vector<2x4xf32>
    %c0_141 = arith.constant 0 : index
    %c0_142 = arith.constant 0 : index
    %477 = vector.load %arg10[%c0_141, %c0_142] : memref<8x1xf32, #tpu.memory_space<vmem>>, vector<4x1xf32>
    %c4 = arith.constant 4 : index
    %c0_143 = arith.constant 0 : index
    %478 = vector.load %arg10[%c4, %c0_143] : memref<8x1xf32, #tpu.memory_space<vmem>>, vector<4x1xf32>
    %cst_144 = arith.constant dense<0.000000e+00> : vector<2x1xf32>
    %479 = tpu.matmul %472, %477, %cst_144 {dimension_numbers = #tpu.dot_dimension_numbers<[1], [0], [0], [1], [0, 0, 1, 1], [], []>} : vector<2x4xf32>, vector<4x1xf32>, vector<2x1xf32> -> vector<2x1xf32>
    %cst_145 = arith.constant dense<0.000000e+00> : vector<2x1xf32>
    %480 = tpu.matmul %476, %478, %cst_145 {dimension_numbers = #tpu.dot_dimension_numbers<[1], [0], [0], [1], [0, 0, 1, 1], [], []>} : vector<2x4xf32>, vector<4x1xf32>, vector<2x1xf32> -> vector<2x1xf32>
    %481 = arith.addf %479, %480 : vector<2x1xf32>
    %c0_146 = arith.constant 0 : index
    %c0_147 = arith.constant 0 : index
    %482 = vector.load %arg11[%c0_146, %c0_147] : memref<1x1xf32, #tpu.memory_space<vmem>>, vector<1x1xf32>
    %483 = vector.broadcast %482 : vector<1x1xf32> to vector<2x1xf32>
    %484 = arith.addf %481, %483 : vector<2x1xf32>
    %c0_148 = arith.constant 0 : index
    %c0_149 = arith.constant 0 : index
    %485 = vector.load %arg12[%c0_148, %c0_149] : memref<2x1xf32, #tpu.memory_space<vmem>>, vector<2x1xf32>
    tpu.vector_store %arg12[%c0_148, %c0_149], %484 {strides = array<i32>} : memref<2x1xf32, #tpu.memory_space<vmem>>, vector<2x1xf32>,
    return
  }
}

</mosaic_0001>

<bundles_post_ra>
// kernel: transformer_forward.1
= control target key start
LH: loop header
LB: loop body
LE: loop exit
PB: predicated region body
PF: predicated region fallthrough
CT: control target
= control target key end

     0   :  { %vm66_vm0 = vcmask 1043456   ;;  %vm59_vm1 = vcmask 31744   ;;  %v4818_v6 = vmov 0.0   ;;  %v55_v7 = vlaneseq  ;;  %s4820_s29 = smov 124   ;;  %s4821_s30 = smov 120   ;;  %s5511_s4 = inlined_call_operand.vmem [shape: f32[2,4,44], index: 4, kind: input, shape index: {}]   ;;  %s5512_s0 = inlined_call_operand.vmem [shape: f32[2,8,4], index: 0, kind: input, shape index: {}]   ;;  %s5513_s2 = inlined_call_operand.vmem [shape: f32[1,8,4], index: 2, kind: input, shape index: {}]   ;;  %s5514_s6 = inlined_call_operand.vmem [shape: f32[2,8,32], index: 6, kind: input, shape index: {}]   ;;  %s5515_s5 = inlined_call_operand.vmem [shape: f32[2,36,4], index: 5, kind: input, shape index: {}]   ;;  %s5516_s1 = inlined_call_operand.vmem [shape: f32[1,8,4], index: 1, kind: input, shape index: {}]   ;;  %s5517_s3 = inlined_call_operand.vmem [shape: f32[1,8,4], index: 3, kind: input, shape index: {}]   ;;  %s5518_s7 = inlined_call_operand.vmem [shape: f32[2,4,44], index: 7, kind: input, shape index: {}]   ;;  %s5519_s9 = inlined_call_operand.vmem [shape: f32[2,8,32], index: 9, kind: input, shape index: {}]   ;;  %s5520_s8 = inlined_call_operand.vmem [shape: f32[2,36,4], index: 8, kind: input, shape index: {}]   ;;  %s5521_s10 = inlined_call_operand.vmem [shape: f32[8,1], index: 10, kind: input, shape index: {}]   ;;  %s5522_s11 = inlined_call_operand.<no memory space> [shape: f32[1,1], index: 11, kind: input, shape index: {}]   ;;  %s5523_s12 = inlined_call_operand.vmem [shape: f32[2,1], index: 12, kind: output, shape index: {}]  }
   0x1   :  { %v4895_v0 = vld [vmem:[%s5511_s4] sm:$0xf]  ;;  %v44_v2 = vld [vmem:[%s5512_s0 + $0x8] sm:$0xff]  ;;  %4455 = vmatprep.subr.mxu1 %v4818_v6  ;;  %vm4819_vm2 = vmmov 0   ;;  %vm148_vm3 = vcmask 15360   ;;  %vm300_vm4 = vcmask 64512  }
   0x2   :  { %v43_v1 = vld [vmem:[%s5512_s0] sm:$0xff]  ;;  %4450 = vmatprep.subr.msk.mxu0 %vm66_vm0, %v4895_v0  ;;  %v4920_v8 = vshrl.u32 %v55_v7, 7  ;;  %4457 = vmatprep.mubr.msk.f32.mxu1 %vm4819_vm2, %v4818_v6  ;;  %s4822_s13 = smov 122   ;;  %s4823_s14 = smov 126   ;;  %vm813_vm5 = vcmask 1041408   ;;  %vm1133_vm6 = vcmask 261120  }
   0x3   :  { %v45_v3 = vld [vmem:[%s5513_s2] sm:$0xff]  ;;  %4451 = vmatpush3.msk.msra.mxu0 %vm66_vm0, %v4895_v0  ;;  %s4824_s15 = smov 118   ;;  %s4825_s18 = smov 116   ;;  %vm4144_vm7 = vcmask 1041409   ;;  %vm4229_vm8 = vcmask 1024  }
   0x4   :  { %v4910_v4 = vadd.f32 %v45_v3, %v43_v1  ;;  %v4912_v5 = vadd.f32 %v45_v3, %v44_v2  ;;  %4460 = vmatprep.subr.mxu0 %v4818_v6  ;;  %v4927_v9 = vsub.s32 0, %v4920_v8  ;;  %v4932_v10 = vld [vmem:[%s5514_s6] sm:$0xff] }
   0x6   :  { %4452 = vmatprep.mubr.msk.f32.mxu0 %vm59_vm1, %v4910_v4  ;;  %v58_v11 = vrot.slane %v4932_v10, %v4927_v9 }
   0x7   :  { %4453 = vmatmul.mubr.msk.f32.vlgmr.msra.gmra.mrb[0].mxu0 %vm59_vm1, %v4912_v5 }
   0x8   :  { %4462 = vmatprep.mubr.msk.f32.mxu0 %vm4819_vm2, %v4818_v6 }
  0xda   :  { %v4454_v12 = vpop.f32.mrb[0].mxu0 }
  0xdb   :  { %v136_v13 = vpop.f32.mrb[1].mxu0  ;;  %v4940_v15 = vadd.f32 %v4454_v12, %v58_v11 }
  0xdc   :  { %v4936_v14 = vadd.f32 %v136_v13, %v58_v11 }
  0xde   :  { %146 = vrot.lane.b32.xlu0 %v4936_v14, %s4820_s29 }
  0xe2   :  { %224 = vrot.lane.b32.xlu0 %v4940_v15, %s4820_s29 }
 0x150   :  { %v147_v16 = vpop.permute.xlu0 %146 }
 0x151   :  { %4456 = vmatpush3.xpose.msk.msra.mxu1 %vm148_vm3, %v147_v16 }
 0x152   :  { %4465 = vmatprep.subr.mxu1 %v4818_v6 }
 0x154   :  { %4458 = vmatmul.mubr.msk.f32.vlgmr.msra.gmra.mrb[0].mxu1 %vm148_vm3, %v4936_v14  ;;  %v225_v17 = vpop.permute.xlu0 %224 }
 0x155   :  { %4461 = vmatpush3.xpose.msk.msra.mxu0 %vm148_vm3, %v225_v17  ;;  %4467 = vmatprep.mubr.msk.f32.mxu1 %vm4819_vm2, %v4818_v6 }
 0x156   :  { %4470 = vmatprep.subr.mxu0 %v4818_v6 }
 0x158   :  { %4463 = vmatmul.mubr.msk.f32.vlgmr.msra.gmra.mrb[2].mxu0 %vm148_vm3, %v4940_v15 }
 0x159   :  { %4472 = vmatprep.mubr.msk.f32.mxu0 %vm4819_vm2, %v4818_v6 }
 0x227   :  { %v219_v18 = vpop.f32.mrb[0].mxu1 }
 0x228   :  { %v4459_v19 = vpop.f32.mrb[1].mxu1  ;;  %v301_v20 = vsel %vm300_vm4, %v219_v18, -inf }
 0x229   :  { %302 = vmax.xlane.f32.xlu1 %v301_v20 }
 0x22b   :  { %v296_v21 = vpop.f32.mrb[2].mxu0 }
 0x22c   :  { %v4464_v22 = vpop.f32.mrb[3].mxu0  ;;  %v304_v23 = vsel %vm300_vm4, %v296_v21, -inf }
 0x22d   :  { %305 = vmax.xlane.f32.xlu1 %v304_v23  ;;  %v5012_v23 = vsub.s32 2, %v4920_v8 }
 0x23e   :  { %323 = vrot.lane.b32.xlu1 %v4936_v14, %s4821_s30 }
 0x242   :  { %399 = vrot.lane.b32.xlu1 %v4940_v15, %s4821_s30 }
 0x246   :  { %477 = vrot.lane.b32.xlu1 %v4936_v14, %s4822_s13 }
 0x24a   :  { %555 = vrot.lane.b32.xlu1 %v4940_v15, %s4822_s13 }
 0x2b6   :  { %v303_v24 = vpop.xlane.xlu1 %302 }
 0x2b7   :  { %v307_v25 = vsub.f32 %v219_v18, %v303_v24  ;;  %v49_v18 = vld [vmem:[%s5515_s5] sm:$0xff]  ;;  %v977_v24 = vrot.slane %v4932_v10, %v5012_v23 }
 0x2b9   :  { %v309_v26 = vmul.f32 1.442695, %v307_v25 }
 0x2ba   :  { %v306_v27 = vpop.xlane.xlu1 %305 }
 0x2bb   :  { %4745 = vpow2.f32 %v309_v26  ;;  %v308_v28 = vsub.f32 %v296_v21, %v306_v27 }
 0x2bd   :  { %v311_v29 = vmul.f32 1.442695, %v308_v28 }
 0x2be   :  { %v324_v30 = vpop.permute.xlu1 %323 }
 0x2bf   :  { %4747 = vpow2.f32 %v311_v29  ;;  %4466 = vmatpush3.msra.mxu1 %v324_v30 }
 0x2c0   :  { %4475 = vmatprep.subr.mxu1 %v4818_v6 }
 0x2c2   :  { %v400_v31 = vpop.permute.xlu1 %399 }
 0x2c3   :  { %4471 = vmatpush3.msra.mxu0 %v400_v31 }
 0x2c4   :  { %4480 = vmatprep.subr.mxu0 %v4818_v6 }
 0x2c5   :  { %v4746_v32 = vpop.eup %4745 }
 0x2c6   :  { %v313_v33 = vsel %vm300_vm4, %v4746_v32, 0.0  ;;  %v478_v36 = vpop.permute.xlu1 %477 }
 0x2c7   :  { %314 = vadd.xlane.f32.xlu0 %v313_v33 }
 0x2c9   :  { %v4748_v34 = vpop.eup %4747 }
 0x2ca   :  { %v316_v35 = vsel %vm300_vm4, %v4748_v34, 0.0  ;;  %v556_v37 = vpop.permute.xlu1 %555 }
 0x2cb   :  { %317 = vadd.xlane.f32.xlu1 %v316_v35 }
 0x2dc   :  { %553 = vrot.lane.b32.xlu1 %v4940_v15, %s4823_s14 }
 0x2dd   :  { %475 = vrot.lane.b32.xlu0 %v4936_v14, %s4823_s14 }
 0x354   :  { %v315_v38 = vpop.xlane.xlu0 %314 }
 0x355   :  { %4749 = vrcp.f32 %v315_v38 }
 0x358   :  { %v318_v39 = vpop.xlane.xlu1 %317  ;;  %v476_v44 = vpop.permute.xlu0 %475 }
 0x359   :  { %4751 = vrcp.f32 %v318_v39 }
 0x35c   :  { %v554_v45 = vpop.permute.xlu1 %553 }
 0x35f   :  { %v4750_v40 = vpop.eup %4749 }
 0x360   :  { %v321_v41 = vmul.f32 %v4750_v40, %v4746_v32 }
 0x362   :  { %4468 = vmatmul.mubr.msk.f32.vlgmr.msra.gmra.mrb[2].mxu1 %vm300_vm4, %v321_v41 }
 0x363   :  { %v4752_v42 = vpop.eup %4751  ;;  %4476 = vmatpush3.xpose.msk.msra.mxu1 %vm148_vm3, %v478_v36  ;;  %4477 = vmatprep.mubr.msk.f32.mxu1 %vm4819_vm2, %v4818_v6 }
 0x364   :  { %v322_v43 = vmul.f32 %v4752_v42, %v4748_v34  ;;  %4485 = vmatprep.subr.mxu1 %v4818_v6  ;;  %v51_v42 = vld [vmem:[%s5515_s5 + $0x10] sm:$0xff] }
 0x366   :  { %4473 = vmatmul.mubr.msk.f32.vlgmr.msra.gmra.mrb[4].mxu0 %vm300_vm4, %v322_v43  ;;  %4478 = vmatmul.mubr.msk.f32.vlgmr.msra.gmra.mrb[4].mxu1 %vm148_vm3, %v476_v44  ;;  %v1120_v43 = vrot.slane %v49_v18, 4 }
 0x367   :  { %4481 = vmatpush3.xpose.msk.msra.mxu0 %vm148_vm3, %v556_v37  ;;  %4482 = vmatprep.mubr.msk.f32.mxu0 %vm4819_vm2, %v4818_v6 }
 0x368   :  { %4490 = vmatprep.subr.mxu0 %v4818_v6  ;;  %4487 = vmatprep.mubr.msk.f32.mxu1 %vm4819_vm2, %v4818_v6 }
 0x36a   :  { %4483 = vmatmul.mubr.msk.f32.vlgmr.msra.gmra.mrb[6].mxu0 %vm148_vm3, %v554_v45  ;;  %v1123_v45 = vrot.slane %v51_v42, 4 }
 0x36b   :  { %4492 = vmatprep.mubr.msk.f32.mxu0 %vm4819_vm2, %v4818_v6 }
 0x435   :  { %v395_v46 = vpop.f32.mrb[2].mxu1 }
 0x436   :  { %v4469_v47 = vpop.f32.mrb[3].mxu1 }
 0x439   :  { %v471_v48 = vpop.f32.mrb[4].mxu0  ;;  %v549_v49 = vpop.f32.mrb[4].mxu1 }
 0x43a   :  { %v4474_v50 = vpop.f32.mrb[5].mxu0  ;;  %v4479_v51 = vpop.f32.mrb[5].mxu1  ;;  %v631_v52 = vsel %vm300_vm4, %v549_v49, -inf }
 0x43b   :  { %632 = vmax.xlane.f32.xlu1 %v631_v52 }
 0x43d   :  { %v627_v53 = vpop.f32.mrb[6].mxu0 }
 0x43e   :  { %v4484_v54 = vpop.f32.mrb[7].mxu0  ;;  %v634_v55 = vsel %vm300_vm4, %v627_v53, -inf }
 0x43f   :  { %635 = vmax.xlane.f32.xlu0 %v634_v55  ;;  %v5035_v55 = vsub.s32 4, %v4920_v8 }
 0x455   :  { %729 = vrot.lane.b32.xlu0 %v4940_v15, %s4824_s15 }
 0x4c8   :  { %v633_v56 = vpop.xlane.xlu1 %632 }
 0x4c9   :  { %v637_v57 = vsub.f32 %v549_v49, %v633_v56  ;;  %v5038_v56 = vsub.s32 5, %v4920_v8 }
 0x4cb   :  { %v639_v60 = vmul.f32 1.442695, %v637_v57  ;;  %v1012_v57 = vrot.slane %v4932_v10, %v5035_v55 }
 0x4cc   :  { %v636_v58 = vpop.xlane.xlu0 %635 }
 0x4cd   :  { %v638_v59 = vsub.f32 %v627_v53, %v636_v58 }
 0x4cf   :  { %v641_v61 = vmul.f32 1.442695, %v638_v59 }
 0x4d0   :  { %v730_v62 = vpop.permute.xlu0 %729 }
 0x4d1   :  { %4753 = vpow2.f32 %v641_v61  ;;  %4491 = vmatpush3.msra.mxu0 %v730_v62  ;;  %v1018_v62 = vrot.slane %v4932_v10, %v5038_v56 }
 0x4d2   :  { %4755 = vpow2.f32 %v639_v60 }
 0x4db   :  { %v4754_v63 = vpop.eup %4753 }
 0x4dc   :  { %v646_v1 = vsel %vm300_vm4, %v4754_v63, 0.0  ;;  %v4756_v2 = vpop.eup %4755 }
 0x4dd   :  { %647 = vadd.xlane.f32.xlu1 %v646_v1  ;;  %v643_v3 = vsel %vm300_vm4, %v4756_v2, 0.0 }
 0x4e1   :  { %644 = vadd.xlane.f32.xlu1 %v643_v3 }
 0x4f2   :  { %653 = vrot.lane.b32.xlu1 %v4936_v14, %s4824_s15  ;;  %v806_v14 = vrot.slane %v49_v18, 2 }
 0x56a   :  { %v648_v7 = vpop.xlane.xlu1 %647 }
 0x56b   :  { %4757 = vrcp.f32 %v648_v7  ;;  %v52_v7 = vld [vmem:[%s5515_s5 + $0x18] sm:$0xff] }
 0x56e   :  { %v645_v11 = vpop.xlane.xlu1 %644 }
 0x56f   :  { %4759 = vrcp.f32 %v645_v11  ;;  %v53_v11 = vld [vmem:[%s5515_s5 + $0x20] sm:$0xf] }
 0x572   :  { %v654_v12 = vpop.permute.xlu1 %653 }
 0x573   :  { %4486 = vmatpush3.msra.mxu1 %v654_v12  ;;  %v1125_v12 = vrot.slane %v52_v7, 4 }
 0x574   :  { %4495 = vmatprep.subr.msk.mxu1 %vm813_vm5, %v806_v14 }
 0x575   :  { %v4758_v13 = vpop.eup %4757 }
 0x576   :  { %v652_v15 = vmul.f32 %v4758_v13, %v4754_v63  ;;  %v1127_v13 = vrot.slane %v53_v11, 4 }
 0x578   :  { %4493 = vmatmul.mubr.msk.f32.vlgmr.msra.gmra.mrb[8].mxu0 %vm300_vm4, %v652_v15  ;;  %v1126_v15 = vsel %vm66_vm0, %v1123_v45, %v1125_v12 }
 0x579   :  { %v4760_v16 = vpop.eup %4759 }
 0x57a   :  { %v651_v17 = vmul.f32 %v4760_v16, %v4756_v2  ;;  %v1128_v16 = vsel %vm66_vm0, %v1125_v12, %v1127_v13 }
 0x57c   :  { %4488 = vmatmul.mubr.msk.f32.vlgmr.msra.gmra.mrb[6].mxu1 %vm300_vm4, %v651_v17  ;;  %v4708_v17 = vpack.c.bf16 %v1128_v16, %v1126_v15 }
 0x57d   :  { %4496 = vmatpush3.msk.msra.mxu1 %vm813_vm5, %v806_v14 }
 0x57e   :  { %4500 = vmatprep.subr.msk.mxu1 %vm813_vm5, %v49_v18 }
 0x64b   :  { %v801_v19 = vpop.f32.mrb[8].mxu0 }
 0x64c   :  { %v4494_v20 = vpop.f32.mrb[9].mxu0 }
 0x64f   :  { %v725_v21 = vpop.f32.mrb[6].mxu1 }
 0x650   :  { %v4489_v22 = vpop.f32.mrb[7].mxu1  ;;  %4497 = vmatprep.mubr.msk.f32.mxu1 %vm148_vm3, %v725_v21 }
 0x651   :  { %4498 = vmatmul.mubr.msk.f32.vlgmr.msra.gmra.mrb[8].mxu1 %vm148_vm3, %v801_v19 }
 0x652   :  { %4501 = vmatpush3.msk.msra.mxu1 %vm813_vm5, %v49_v18  ;;  %4502 = vmatprep.mubr.msk.f32.mxu1 %vm148_vm3, %v395_v46  ;;  %v5056_v18 = vsub.s32 1, %v4920_v8 }
 0x654   :  { %v1024_v14 = vrot.slane %v4932_v10, %v5056_v18 }
 0x659   :  { %4503 = vmatmul.mubr.msk.f32.vlgmr.msra.gmra.mrb[8].mxu1 %vm148_vm3, %v471_v48 }
 0x72c   :  { %v4504_v25 = vpop.f32.mrb[8].mxu1 }
 0x72d   :  { %v979_v26 = vadd.f32 %v4504_v25, %v977_v24  ;;  %v965_v27 = vpop.f32.mrb[9].mxu1 }
 0x72e   :  { %v978_v28 = vadd.f32 %v977_v24, %v965_v27 }
 0x72f   :  { %v981_v29 = vadd.f32 %v979_v26, %v4912_v5  ;;  %v5065_v26 = vsub.s32 3, %v4920_v8 }
 0x730   :  { %v980_v30 = vadd.f32 %v978_v28, %v4910_v4  ;;  %v50_v4 = vld [vmem:[%s5515_s5 + $0x8] sm:$0xff] }
 0x731   :  { %v985_v31 = vsel %vm59_vm1, %v981_v29, 0.0  ;;  %v1121_v44 = vrot.slane %v50_v4, 4  ;;  %v1115_v27 = vrot.slane %v4932_v10, %v5065_v26 }
 0x732   :  { %986 = vadd.xlane.f32.xlu0 %v985_v31  ;;  %v982_v32 = vsel %vm59_vm1, %v980_v30, 0.0 }
 0x733   :  { %983 = vadd.xlane.f32.xlu1 %v982_v32  ;;  %v1122_v49 = vsel %vm66_vm0, %v1120_v43, %v1121_v44  ;;  %v1124_v50 = vsel %vm66_vm0, %v1121_v44, %v1123_v45  ;;  %v5076_v44 = vld [vmem:[%s5511_s4 + $0x4] sm:$0xf] }
 0x734   :  { %v4704_v53 = vpack.c.bf16 %v1124_v50, %v1122_v49  ;;  %4521 = vmatprep.subr.msk.mxu1 %vm66_vm0, %v5076_v44 }
 0x735   :  { %4522 = vmatpush3.msk.msra.mxu1 %vm66_vm0, %v5076_v44 }
 0x736   :  { %4526 = vmatprep.subr.mxu1 %v4818_v6 }
 0x7bf   :  { %v987_v33 = vpop.xlane.xlu0 %986 }
 0x7c0   :  { %v990_v34 = vmul.f32 0.25, %v987_v33  ;;  %v984_v35 = vpop.xlane.xlu1 %983 }
 0x7c1   :  { %v989_v36 = vmul.f32 0.25, %v984_v35 }
 0x7c2   :  { %v992_v37 = vsub.f32 %v981_v29, %v990_v34 }
 0x7c3   :  { %v991_v38 = vsub.f32 %v980_v30, %v989_v36 }
 0x7c4   :  { %v994_v39 = vmul.f32 %v992_v37, %v992_v37 }
 0x7c5   :  { %v993_v40 = vmul.f32 %v991_v38, %v991_v38 }
 0x7c6   :  { %v998_v41 = vsel %vm59_vm1, %v994_v39, 0.0 }
 0x7c7   :  { %999 = vadd.xlane.f32.xlu0 %v998_v41  ;;  %v995_v5 = vsel %vm59_vm1, %v993_v40, 0.0 }
 0x7c8   :  { %996 = vadd.xlane.f32.xlu1 %v995_v5 }
 0x7d9   :  { %1025 = vrot.lane.b32.xlu1 %v4895_v0, %s4825_s18 }
 0x854   :  { %v1000_v46 = vpop.xlane.xlu0 %999 }
 0x855   :  { %v1002_v47 = vmul.f32 0.25, %v1000_v46  ;;  %v997_v48 = vpop.xlane.xlu1 %996 }
 0x856   :  { %v1001_v51 = vmul.f32 0.25, %v997_v48 }
 0x857   :  { %v1004_v0 = vadd.f32 1e-05, %v1002_v47 }
 0x858   :  { %v1003_v52 = vadd.f32 1e-05, %v1001_v51  ;;  %v5084_v51 = vsub.s32 6, %v4920_v8 }
 0x859   :  { %4761 = vrsqrt.f32 %v1004_v0  ;;  %v1026_v54 = vpop.permute.xlu1 %1025  ;;  %v5087_v0 = vsub.s32 7, %v4920_v8  ;;  %v5106_v8 = vld [vmem:[%s5514_s6 + $0x8] sm:$0xff] }
 0x85a   :  { %4763 = vrsqrt.f32 %v1003_v52  ;;  %4505 = vmatprep.subr.msk.mxu0 %vm66_vm0, %v1026_v54  ;;  %v1246_v52 = vrot.slane %v4932_v10, %v5084_v51 }
 0x85b   :  { %4506 = vmatpush3.msk.msra.mxu0 %vm66_vm0, %v1026_v54 }
 0x85c   :  { %4705 = vmatprep.subr.bf16.mxu0 %v4704_v53 }
 0x863   :  { %v4762_v58 = vpop.eup %4761 }
 0x864   :  { %v4764_v59 = vpop.eup %4763  ;;  %v1008_v60 = vmul.f32 %v4762_v58, %v992_v37 }
 0x865   :  { %v1007_v61 = vmul.f32 %v4764_v59, %v991_v38 }
 0x866   :  { %v1014_v63 = vmul.f32 %v1012_v57, %v1008_v60 }
 0x867   :  { %v1013_v1 = vmul.f32 %v1012_v57, %v1007_v61  ;;  %v1252_v57 = vrot.slane %v4932_v10, %v5087_v0  ;;  %v1268_v10 = vrot.slane %v5106_v8, %v4927_v9 }
 0x868   :  { %v1020_v3 = vadd.f32 %v1018_v62, %v1014_v63 }
 0x869   :  { %v1019_v2 = vadd.f32 %v1018_v62, %v1013_v1 }
 0x86b   :  { %4507 = vmatprep.mubr.msk.f32.mxu0 %vm59_vm1, %v1019_v2 }
 0x86c   :  { %4508 = vmatmul.mubr.msk.f32.vlgmr.msra.gmra.mrb[10].mxu0 %vm59_vm1, %v1020_v3 }
 0x86d   :  { %4707 = vmatpush3.bf16.msra.mxu0 %v4704_v53 }
 0x86e   :  { %4709 = vmatprep.subr.bf16.mxu0 %v4708_v17 }
 0x871   :  { %4711 = vmatpush3.bf16.msra.mxu0 %v4708_v17 }
 0x872   :  { %4531 = vmatprep.subr.mxu0 %v4818_v6 }
 0x93f   :  { %v4509_v19 = vpop.f32.mrb[10].mxu0 }
 0x940   :  { %v1107_v20 = vadd.f32 %v4509_v19, %v1024_v14  ;;  %v1101_v21 = vpop.f32.mrb[11].mxu0 }
 0x941   :  { %v1102_v22 = vadd.f32 %v1101_v21, %v1024_v14 }
 0x942   :  { %v1111_v25 = vmax.f32 %v1107_v20, 0.0 }
 0x943   :  { %v1110_v24 = vmax.f32 %v1102_v22, 0.0 }
 0x945   :  { %4518 = vmatprep.mubr.msk.f32.mxu0 %vm1133_vm6, %v1110_v24 }
 0x946   :  { %4519 = vmatmul.mubr.msk.f32.vlgmr.msra.gmra.mrb[12].mxu0 %vm1133_vm6, %v1111_v25 }
 0x947   :  { %4533 = vmatprep.mubr.msk.f32.mxu0 %vm4819_vm2, %v4818_v6 }
 0xa19   :  { %v4520_v28 = vpop.f32.mrb[12].mxu0 }
 0xa1a   :  { %v1206_v29 = vpop.f32.mrb[13].mxu0  ;;  %v1212_v30 = vadd.f32 %v4520_v28, %v1115_v27 }
 0xa1b   :  { %v1207_v31 = vadd.f32 %v1206_v29, %v1115_v27 }
 0xa1c   :  { %v1216_v34 = vadd.f32 %v1212_v30, %v1020_v3 }
 0xa1d   :  { %v1215_v32 = vadd.f32 %v1207_v31, %v1019_v2 }
 0xa1e   :  { %v1220_v35 = vsel %vm59_vm1, %v1216_v34, 0.0 }
 0xa1f   :  { %v1217_v33 = vsel %vm59_vm1, %v1215_v32, 0.0 }
 0xa20   :  { %1218 = vadd.xlane.f32.xlu0 %v1217_v33 }
 0xa24   :  { %1221 = vadd.xlane.f32.xlu0 %v1220_v35 }
 0xaad   :  { %v1219_v36 = vpop.xlane.xlu0 %1218 }
 0xaae   :  { %v1223_v37 = vmul.f32 0.25, %v1219_v36 }
 0xab0   :  { %v1225_v38 = vsub.f32 %v1215_v32, %v1223_v37 }
 0xab1   :  { %v1222_v39 = vpop.xlane.xlu0 %1221 }
 0xab2   :  { %v1224_v40 = vmul.f32 0.25, %v1222_v39  ;;  %v1227_v41 = vmul.f32 %v1225_v38, %v1225_v38 }
 0xab4   :  { %v1226_v5 = vsub.f32 %v1216_v34, %v1224_v40  ;;  %v1229_v4 = vsel %vm59_vm1, %v1227_v41, 0.0 }
 0xab5   :  { %1230 = vadd.xlane.f32.xlu0 %v1229_v4 }
 0xab6   :  { %v1228_v42 = vmul.f32 %v1226_v5, %v1226_v5 }
 0xab8   :  { %v1232_v43 = vsel %vm59_vm1, %v1228_v42, 0.0 }
 0xab9   :  { %1233 = vadd.xlane.f32.xlu0 %v1232_v43 }
 0xb42   :  { %v1231_v45 = vpop.xlane.xlu0 %1230 }
 0xb43   :  { %v1235_v46 = vmul.f32 0.25, %v1231_v45 }
 0xb45   :  { %v1237_v47 = vadd.f32 1e-05, %v1235_v46 }
 0xb46   :  { %v1234_v48 = vpop.xlane.xlu0 %1233 }
 0xb47   :  { %4765 = vrsqrt.f32 %v1237_v47  ;;  %v1236_v49 = vmul.f32 0.25, %v1234_v48 }
 0xb49   :  { %v1238_v50 = vadd.f32 1e-05, %v1236_v49 }
 0xb4b   :  { %4767 = vrsqrt.f32 %v1238_v50 }
 0xb51   :  { %v4766_v53 = vpop.eup %4765 }
 0xb52   :  { %v1241_v54 = vmul.f32 %v4766_v53, %v1225_v38 }
 0xb54   :  { %v1247_v58 = vmul.f32 %v1246_v52, %v1241_v54 }
 0xb55   :  { %v4768_v59 = vpop.eup %4767 }
 0xb56   :  { %v1242_v60 = vmul.f32 %v4768_v59, %v1226_v5  ;;  %v5093_v61 = vadd.f32 %v1252_v57, %v1247_v58 }
 0xb58   :  { %v1248_v62 = vmul.f32 %v1246_v52, %v1242_v60  ;;  %4523 = vmatprep.mubr.msk.f32.mxu1 %vm59_vm1, %v5093_v61 }
 0xb5a   :  { %v5097_v63 = vadd.f32 %v1252_v57, %v1248_v62 }
 0xb5c   :  { %4524 = vmatmul.mubr.msk.f32.vlgmr.msra.gmra.mrb[10].mxu1 %vm59_vm1, %v5097_v63 }
 0xb5d   :  { %4528 = vmatprep.mubr.msk.f32.mxu1 %vm4819_vm2, %v4818_v6 }
 0xc2f   :  { %v4525_v1 = vpop.f32.mrb[10].mxu1 }
 0xc30   :  { %v5110_v2 = vadd.f32 %v4525_v1, %v1268_v10  ;;  %v1344_v3 = vpop.f32.mrb[11].mxu1 }
 0xc31   :  { %v5112_v7 = vadd.f32 %v1344_v3, %v1268_v10 }
 0xc32   :  { %1431 = vrot.lane.b32.xlu0 %v5110_v2, %s4820_s29 }
 0xc33   :  { %1354 = vrot.lane.b32.xlu1 %v5112_v7, %s4820_s29 }
 0xca4   :  { %v1432_v11 = vpop.permute.xlu0 %1431 }
 0xca5   :  { %4532 = vmatpush3.xpose.msk.msra.mxu0 %vm148_vm3, %v1432_v11  ;;  %v1355_v12 = vpop.permute.xlu1 %1354 }
 0xca6   :  { %4527 = vmatpush3.xpose.msk.msra.mxu1 %vm148_vm3, %v1355_v12  ;;  %4541 = vmatprep.subr.mxu0 %v4818_v6 }
 0xca7   :  { %4536 = vmatprep.subr.mxu1 %v4818_v6 }
 0xca8   :  { %4534 = vmatmul.mubr.msk.f32.vlgmr.msra.gmra.mrb[14].mxu0 %vm148_vm3, %v5110_v2 }
 0xca9   :  { %4529 = vmatmul.mubr.msk.f32.vlgmr.msra.gmra.mrb[12].mxu1 %vm148_vm3, %v5112_v7  ;;  %4543 = vmatprep.mubr.msk.f32.mxu0 %vm4819_vm2, %v4818_v6 }
 0xcaa   :  { %4538 = vmatprep.mubr.msk.f32.mxu1 %vm4819_vm2, %v4818_v6 }
 0xd7b   :  { %v1503_v13 = vpop.f32.mrb[14].mxu0 }
 0xd7c   :  { %v1426_v15 = vpop.f32.mrb[12].mxu1  ;;  %v4535_v16 = vpop.f32.mrb[15].mxu0  ;;  %v1510_v17 = vsel %vm300_vm4, %v1503_v13, -inf }
 0xd7d   :  { %1511 = vmax.xlane.f32.xlu0 %v1510_v17  ;;  %v4530_v14 = vpop.f32.mrb[13].mxu1  ;;  %v1507_v19 = vsel %vm300_vm4, %v1426_v15, -inf }
 0xd7e   :  { %1508 = vmax.xlane.f32.xlu1 %v1507_v19 }
 0xd8f   :  { %1529 = vrot.lane.b32.xlu1 %v5112_v7, %s4821_s30 }
 0xd93   :  { %1605 = vrot.lane.b32.xlu0 %v5110_v2, %s4821_s30  ;;  %1683 = vrot.lane.b32.xlu1 %v5112_v7, %s4822_s13 }
 0xd97   :  { %1759 = vrot.lane.b32.xlu0 %v5110_v2, %s4823_s14  ;;  %1761 = vrot.lane.b32.xlu1 %v5110_v2, %s4822_s13 }
 0xe0a   :  { %v1512_v20 = vpop.xlane.xlu0 %1511 }
 0xe0b   :  { %v1514_v21 = vsub.f32 %v1503_v13, %v1512_v20  ;;  %v1509_v22 = vpop.xlane.xlu1 %1508 }
 0xe0c   :  { %v1513_v24 = vsub.f32 %v1426_v15, %v1509_v22 }
 0xe0d   :  { %v1517_v25 = vmul.f32 1.442695, %v1514_v21 }
 0xe0e   :  { %v1515_v27 = vmul.f32 1.442695, %v1513_v24  ;;  %v1606_v28 = vpop.permute.xlu0 %1605 }
 0xe0f   :  { %4769 = vpow2.f32 %v1517_v25  ;;  %4542 = vmatpush3.msra.mxu0 %v1606_v28  ;;  %v1530_v29 = vpop.permute.xlu1 %1529  ;;  %v2459_v28 = vld [vmem:[%s5517_s3] sm:$0xff] }
 0xe10   :  { %4537 = vmatpush3.msra.mxu1 %v1530_v29  ;;  %4551 = vmatprep.subr.mxu0 %v4818_v6  ;;  %4771 = vpow2.f32 %v1515_v27  ;;  %v2458_v27 = vld [vmem:[%s5516_s1] sm:$0xff] }
 0xe11   :  { %4546 = vmatprep.subr.mxu1 %v4818_v6  ;;  %v5199_v29 = vld [vmem:[%s5518_s7] sm:$0xf] }
 0xe12   :  { %v1760_v5 = vpop.permute.xlu0 %1759 }
 0xe13   :  { %v1684_v34 = vpop.permute.xlu1 %1683 }
 0xe17   :  { %v1762_v35 = vpop.permute.xlu1 %1761 }
 0xe19   :  { %v4770_v30 = vpop.eup %4769 }
 0xe1a   :  { %v1522_v31 = vsel %vm300_vm4, %v4770_v30, 0.0  ;;  %v4772_v32 = vpop.eup %4771 }
 0xe1b   :  { %1523 = vadd.xlane.f32.xlu1 %v1522_v31  ;;  %v1519_v33 = vsel %vm300_vm4, %v4772_v32, 0.0  ;;  %v5216_v31 = vld [vmem:[%s5519_s9] sm:$0xff] }
 0xe1f   :  { %1520 = vadd.xlane.f32.xlu1 %v1519_v33 }
 0xe30   :  { %1681 = vrot.lane.b32.xlu1 %v5112_v7, %s4823_s14 }
 0xea8   :  { %v1524_v36 = vpop.xlane.xlu1 %1523 }
 0xea9   :  { %4773 = vrcp.f32 %v1524_v36 }
 0xeac   :  { %v1521_v37 = vpop.xlane.xlu1 %1520 }
 0xead   :  { %4775 = vrcp.f32 %v1521_v37 }
 0xeb0   :  { %v1682_v4 = vpop.permute.xlu1 %1681 }
 0xeb3   :  { %v4774_v38 = vpop.eup %4773 }
 0xeb4   :  { %v1528_v39 = vmul.f32 %v4774_v38, %v4770_v30  ;;  %v5202_v30 = vadd.f32 %v2459_v28, %v2458_v27  ;;  %v2182_v38 = vrot.slane %v5106_v8, %v5012_v23  ;;  %v4263_v28 = vld [vmem:[%s5515_s5 + $0x30] sm:$0xff] }
 0xeb6   :  { %4544 = vmatmul.mubr.msk.f32.vlgmr.msra.gmra.mrb[16].mxu0 %vm300_vm4, %v1528_v39 }
 0xeb7   :  { %v4776_v40 = vpop.eup %4775  ;;  %4552 = vmatpush3.xpose.msk.msra.mxu0 %vm148_vm3, %v1762_v35  ;;  %4553 = vmatprep.mubr.msk.f32.mxu0 %vm4819_vm2, %v4818_v6 }
 0xeb8   :  { %v1527_v41 = vmul.f32 %v4776_v40, %v4772_v32  ;;  %4561 = vmatprep.subr.mxu0 %v4818_v6 }
 0xeba   :  { %4539 = vmatmul.mubr.msk.f32.vlgmr.msra.gmra.mrb[14].mxu1 %vm300_vm4, %v1527_v41  ;;  %4554 = vmatmul.mubr.msk.f32.vlgmr.msra.gmra.mrb[18].mxu0 %vm148_vm3, %v1760_v5 }
 0xebb   :  { %4547 = vmatpush3.xpose.msk.msra.mxu1 %vm148_vm3, %v1684_v34  ;;  %4548 = vmatprep.mubr.msk.f32.mxu1 %vm4819_vm2, %v4818_v6  ;;  %v2471_v34 = vrot.slane %v5216_v31, %v4927_v9 }
 0xebc   :  { %4556 = vmatprep.subr.mxu1 %v4818_v6  ;;  %4563 = vmatprep.mubr.msk.f32.mxu0 %vm4819_vm2, %v4818_v6 }
 0xebe   :  { %4549 = vmatmul.mubr.msk.f32.vlgmr.msra.gmra.mrb[16].mxu1 %vm148_vm3, %v1682_v4 }
 0xebf   :  { %4558 = vmatprep.mubr.msk.f32.mxu1 %vm4819_vm2, %v4818_v6 }
 0xf89   :  { %v1677_v42 = vpop.f32.mrb[16].mxu0 }
 0xf8a   :  { %v4545_v43 = vpop.f32.mrb[17].mxu0 }
 0xf8d   :  { %v1601_v45 = vpop.f32.mrb[14].mxu1  ;;  %v1833_v46 = vpop.f32.mrb[18].mxu0 }
 0xf8e   :  { %v4540_v47 = vpop.f32.mrb[15].mxu1  ;;  %v4555_v48 = vpop.f32.mrb[19].mxu0  ;;  %v1840_v49 = vsel %vm300_vm4, %v1833_v46, -inf }
 0xf8f   :  { %1841 = vmax.xlane.f32.xlu0 %v1840_v49 }
 0xf91   :  { %v1755_v50 = vpop.f32.mrb[16].mxu1 }
 0xf92   :  { %v4550_v52 = vpop.f32.mrb[17].mxu1  ;;  %v1837_v53 = vsel %vm300_vm4, %v1755_v50, -inf }
 0xf93   :  { %1838 = vmax.xlane.f32.xlu1 %v1837_v53 }
0x101c   :  { %v1842_v54 = vpop.xlane.xlu0 %1841 }
0x101d   :  { %v1844_v57 = vsub.f32 %v1833_v46, %v1842_v54 }
0x101f   :  { %v1847_v58 = vmul.f32 1.442695, %v1844_v57 }
0x1020   :  { %v1839_v59 = vpop.xlane.xlu1 %1838 }
0x1021   :  { %4777 = vpow2.f32 %v1847_v58  ;;  %v1843_v60 = vsub.f32 %v1755_v50, %v1839_v59 }
0x1023   :  { %v1845_v62 = vmul.f32 1.442695, %v1843_v60 }
0x1025   :  { %4779 = vpow2.f32 %v1845_v62 }
0x102b   :  { %v4778_v10 = vpop.eup %4777 }
0x102c   :  { %v1852_v1 = vsel %vm300_vm4, %v4778_v10, 0.0 }
0x102d   :  { %1853 = vadd.xlane.f32.xlu1 %v1852_v1 }
0x102f   :  { %v4780_v3 = vpop.eup %4779 }
0x1030   :  { %v1849_v11 = vsel %vm300_vm4, %v4780_v3, 0.0 }
0x1031   :  { %1850 = vadd.xlane.f32.xlu0 %v1849_v11 }
0x103e   :  { %1935 = vrot.lane.b32.xlu1 %v5110_v2, %s4824_s15  ;;  %v5177_v2 = vld [vmem:[%s5515_s5 + $0x28] sm:$0xff] }
0x1047   :  { %1859 = vrot.lane.b32.xlu0 %v5112_v7, %s4824_s15  ;;  %v2012_v7 = vrot.slane %v5177_v2, 2 }
0x10ba   :  { %v1854_v12 = vpop.xlane.xlu1 %1853 }
0x10bb   :  { %4781 = vrcp.f32 %v1854_v12 }
0x10be   :  { %v1851_v13 = vpop.xlane.xlu0 %1850  ;;  %v1936_v15 = vpop.permute.xlu1 %1935 }
0x10bf   :  { %4783 = vrcp.f32 %v1851_v13  ;;  %4562 = vmatpush3.msra.mxu0 %v1936_v15 }
0x10c2   :  { %v1860_v16 = vpop.permute.xlu0 %1859 }
0x10c3   :  { %4557 = vmatpush3.msra.mxu1 %v1860_v16 }
0x10c4   :  { %4566 = vmatprep.subr.msk.mxu1 %vm813_vm5, %v2012_v7 }
0x10c5   :  { %v4782_v17 = vpop.eup %4781 }
0x10c6   :  { %v1858_v14 = vmul.f32 %v4782_v17, %v4778_v10  ;;  %v2216_v17 = vrot.slane %v5106_v8, %v5035_v55 }
0x10c8   :  { %4564 = vmatmul.mubr.msk.f32.vlgmr.msra.gmra.mrb[20].mxu0 %vm300_vm4, %v1858_v14 }
0x10c9   :  { %v4784_v19 = vpop.eup %4783 }
0x10ca   :  { %v1857_v20 = vmul.f32 %v4784_v19, %v4780_v3 }
0x10cc   :  { %4559 = vmatmul.mubr.msk.f32.vlgmr.msra.gmra.mrb[18].mxu1 %vm300_vm4, %v1857_v20  ;;  %v2222_v20 = vrot.slane %v5106_v8, %v5038_v56 }
0x10cd   :  { %4567 = vmatpush3.msk.msra.mxu1 %vm813_vm5, %v2012_v7 }
0x10ce   :  { %4571 = vmatprep.subr.msk.mxu1 %vm813_vm5, %v5177_v2 }
0x119b   :  { %v2007_v21 = vpop.f32.mrb[20].mxu0 }
0x119c   :  { %v4565_v22 = vpop.f32.mrb[21].mxu0 }
0x119f   :  { %v1931_v24 = vpop.f32.mrb[18].mxu1 }
0x11a0   :  { %v4560_v25 = vpop.f32.mrb[19].mxu1  ;;  %4568 = vmatprep.mubr.msk.f32.mxu1 %vm148_vm3, %v1931_v24 }
0x11a1   :  { %4569 = vmatmul.mubr.msk.f32.vlgmr.msra.gmra.mrb[20].mxu1 %vm148_vm3, %v2007_v21 }
0x11a2   :  { %4572 = vmatpush3.msk.msra.mxu1 %vm813_vm5, %v5177_v2  ;;  %4573 = vmatprep.mubr.msk.f32.mxu1 %vm148_vm3, %v1601_v45 }
0x11a3   :  { %4592 = vmatprep.subr.mxu1 %v4818_v6 }
0x11a9   :  { %4574 = vmatmul.mubr.msk.f32.vlgmr.msra.gmra.mrb[20].mxu1 %vm148_vm3, %v1677_v42 }
0x11aa   :  { %4593 = vmatpush3.msk.msra.mxu1 %vm66_vm0, %v5199_v29  ;;  %4594 = vmatprep.mubr.msk.f32.mxu1 %vm4819_vm2, %v4818_v6 }
0x11ab   :  { %4597 = vmatprep.subr.mxu1 %v4818_v6 }
0x11ad   :  { %4595 = vmatmul.mubr.msk.f32.vlgmr.msra.gmra.mrb[22].mxu1 %vm59_vm1, %v5202_v30 }
0x11ae   :  { %4599 = vmatprep.mubr.msk.f32.mxu1 %vm4819_vm2, %v4818_v6 }
0x127c   :  { %v4575_v32 = vpop.f32.mrb[20].mxu1 }
0x127d   :  { %v2170_v33 = vpop.f32.mrb[21].mxu1  ;;  %v2184_v5 = vadd.f32 %v4575_v32, %v2182_v38  ;;  %v4264_v32 = vld [vmem:[%s5515_s5 + $0x38] sm:$0xff] }
0x127e   :  { %v2183_v39 = vadd.f32 %v2182_v38, %v2170_v33  ;;  %v2324_v33 = vrot.slane %v5177_v2, 4 }
0x127f   :  { %v2186_v4 = vadd.f32 %v2184_v5, %v5097_v63 }
0x1280   :  { %v2544_v35 = vpop.f32.mrb[22].mxu1  ;;  %v2185_v40 = vadd.f32 %v2183_v39, %v5093_v61 }
0x1281   :  { %v5220_v36 = vadd.f32 %v2544_v35, %v2471_v34  ;;  %v4596_v37 = vpop.f32.mrb[23].mxu1  ;;  %v2190_v42 = vsel %vm59_vm1, %v2186_v4, 0.0  ;;  %v2325_v34 = vrot.slane %v4263_v28, 4  ;;  %v2327_v35 = vrot.slane %v4264_v32, 4 }
0x1282   :  { %v2187_v41 = vsel %vm59_vm1, %v2185_v40, 0.0 }
0x1283   :  { %2714 = vrot.lane.b32.xlu0 %v5220_v36, %s4822_s13  ;;  %2549 = vrot.lane.b32.xlu1 %v5220_v36, %s4820_s29  ;;  %v2326_v37 = vsel %vm66_vm0, %v2324_v33, %v2325_v34  ;;  %v2328_v38 = vsel %vm66_vm0, %v2325_v34, %v2327_v35  ;;  %v3032_v33 = vrot.slane %v5216_v31, %v5012_v23 }
0x1284   :  { %v4712_v39 = vpack.c.bf16 %v2328_v38, %v2326_v37 }
0x1287   :  { %2712 = vrot.lane.b32.xlu1 %v5220_v36, %s4823_s14 }
0x12a2   :  { %2188 = vadd.xlane.f32.xlu0 %v2187_v41  ;;  %v4266_v41 = vld [vmem:[%s5515_s5 + $0x48] sm:$0xf] }
0x12ab   :  { %2191 = vadd.xlane.f32.xlu1 %v2190_v42 }
0x12bc   :  { %2229 = vrot.lane.b32.xlu1 %v5076_v44, %s4825_s18 }
0x12c0   :  { %2636 = vrot.lane.b32.xlu1 %v5220_v36, %s4821_s30 }
0x12f5   :  { %v2550_v43 = vpop.permute.xlu1 %2549  ;;  %v2715_v61 = vpop.permute.xlu0 %2714 }
0x12f6   :  { %4598 = vmatpush3.xpose.msk.msra.mxu1 %vm148_vm3, %v2550_v43 }
0x12f7   :  { %4607 = vmatprep.subr.mxu1 %v4818_v6 }
0x12f9   :  { %4600 = vmatmul.mubr.msk.f32.vlgmr.msra.gmra.mrb[24].mxu1 %vm148_vm3, %v5220_v36  ;;  %v2713_v44 = vpop.permute.xlu1 %2712 }
0x12fa   :  { %4608 = vmatpush3.xpose.msk.msra.mxu1 %vm148_vm3, %v2715_v61  ;;  %4609 = vmatprep.mubr.msk.f32.mxu1 %vm4819_vm2, %v4818_v6 }
0x12fb   :  { %4617 = vmatprep.subr.mxu1 %v4818_v6 }
0x12fd   :  { %4610 = vmatmul.mubr.msk.f32.vlgmr.msra.gmra.mrb[26].mxu1 %vm148_vm3, %v2713_v44 }
0x12fe   :  { %4619 = vmatprep.mubr.msk.f32.mxu1 %vm4819_vm2, %v4818_v6 }
0x132f   :  { %v2189_v63 = vpop.xlane.xlu0 %2188 }
0x1330   :  { %v2193_v45 = vmul.f32 0.25, %v2189_v63 }
0x1332   :  { %v2195_v46 = vsub.f32 %v2185_v40, %v2193_v45  ;;  %v4265_v40 = vld [vmem:[%s5515_s5 + $0x40] sm:$0xff] }
0x1333   :  { %v2329_v5 = vrot.slane %v4265_v40, 4 }
0x1334   :  { %v2197_v47 = vmul.f32 %v2195_v46, %v2195_v46 }
0x1335   :  { %v2330_v2 = vsel %vm66_vm0, %v2327_v35, %v2329_v5 }
0x1336   :  { %v2199_v48 = vsel %vm59_vm1, %v2197_v47, 0.0 }
0x1337   :  { %2200 = vadd.xlane.f32.xlu0 %v2199_v48 }
0x1338   :  { %v2192_v49 = vpop.xlane.xlu1 %2191 }
0x1339   :  { %v2194_v50 = vmul.f32 0.25, %v2192_v49 }
0x133b   :  { %v2196_v52 = vsub.f32 %v2186_v4, %v2194_v50  ;;  %v2331_v4 = vrot.slane %v4266_v41, 4 }
0x133c   :  { %v2230_v53 = vpop.permute.xlu1 %2229 }
0x133d   :  { %v2198_v54 = vmul.f32 %v2196_v52, %v2196_v52  ;;  %4576 = vmatprep.subr.msk.mxu0 %vm66_vm0, %v2230_v53  ;;  %v2332_v42 = vsel %vm66_vm0, %v2329_v5, %v2331_v4 }
0x133e   :  { %4577 = vmatpush3.msk.msra.mxu0 %vm66_vm0, %v2230_v53  ;;  %v4716_v43 = vpack.c.bf16 %v2332_v42, %v2330_v2  ;;  %v2228_v53 = vrot.slane %v5106_v8, %v5056_v18 }
0x133f   :  { %v2202_v57 = vsel %vm59_vm1, %v2198_v54, 0.0  ;;  %4713 = vmatprep.subr.bf16.mxu0 %v4712_v39 }
0x1340   :  { %2203 = vadd.xlane.f32.xlu0 %v2202_v57 }
0x13c4   :  { %v2201_v58 = vpop.xlane.xlu0 %2200 }
0x13c5   :  { %v2205_v59 = vmul.f32 0.25, %v2201_v58 }
0x13c7   :  { %v2207_v60 = vadd.f32 1e-05, %v2205_v59 }
0x13c9   :  { %4785 = vrsqrt.f32 %v2207_v60 }
0x13cc   :  { %v2621_v62 = vpop.f32.mrb[24].mxu1 }
0x13cd   :  { %v4601_v10 = vpop.f32.mrb[25].mxu1  ;;  %v2204_v1 = vpop.xlane.xlu0 %2203  ;;  %v2625_v3 = vsel %vm300_vm4, %v2621_v62, -inf }
0x13ce   :  { %v2206_v11 = vmul.f32 0.25, %v2204_v1  ;;  %2626 = vmax.xlane.f32.xlu0 %v2625_v3  ;;  %v2637_v10 = vpop.permute.xlu1 %2636 }
0x13d0   :  { %v2208_v12 = vadd.f32 1e-05, %v2206_v11  ;;  %v2786_v13 = vpop.f32.mrb[26].mxu1 }
0x13d1   :  { %v4611_v15 = vpop.f32.mrb[27].mxu1  ;;  %v2790_v16 = vsel %vm300_vm4, %v2786_v13, -inf }
0x13d2   :  { %4787 = vrsqrt.f32 %v2208_v12  ;;  %2791 = vmax.xlane.f32.xlu0 %v2790_v16  ;;  %v2462_v16 = vld [vmem:[%s5520_s8] sm:$0xff] }
0x13d3   :  { %v4786_v14 = vpop.eup %4785 }
0x13d4   :  { %v2211_v19 = vmul.f32 %v4786_v14, %v2195_v46  ;;  %v5311_v14 = vrot.slane %v5106_v8, %v5065_v26 }
0x13d6   :  { %v2217_v7 = vmul.f32 %v2216_v17, %v2211_v19 }
0x13d8   :  { %v5259_v21 = vadd.f32 %v2222_v20, %v2217_v7 }
0x13da   :  { %4578 = vmatprep.mubr.msk.f32.mxu0 %vm59_vm1, %v5259_v21 }
0x13dc   :  { %v4788_v22 = vpop.eup %4787 }
0x13dd   :  { %v2212_v24 = vmul.f32 %v4788_v22, %v2196_v52 }
0x13df   :  { %v2218_v25 = vmul.f32 %v2216_v17, %v2212_v24  ;;  %v2878_v17 = vrot.slane %v2462_v16, 2 }
0x13e1   :  { %v5263_v27 = vadd.f32 %v2222_v20, %v2218_v25  ;;  %4618 = vmatpush3.msk.msra.mxu1 %vm813_vm5, %v2878_v17 }
0x13e2   :  { %4627 = vmatprep.subr.mxu1 %v4818_v6 }
0x13e3   :  { %4579 = vmatmul.mubr.msk.f32.vlgmr.msra.gmra.mrb[22].mxu0 %vm59_vm1, %v5263_v27 }
0x13e4   :  { %4715 = vmatpush3.bf16.msra.mxu0 %v4712_v39 }
0x13e5   :  { %4717 = vmatprep.subr.bf16.mxu0 %v4716_v43 }
0x13e8   :  { %4719 = vmatpush3.bf16.msra.mxu0 %v4716_v43 }
0x13e9   :  { %4602 = vmatprep.subr.mxu0 %v4818_v6 }
0x145b   :  { %v2627_v61 = vpop.xlane.xlu0 %2626 }
0x145c   :  { %v2628_v44 = vsub.f32 %v2621_v62, %v2627_v61  ;;  %v3148_v61 = vrot.slane %v2462_v16, 4 }
0x145e   :  { %v2629_v63 = vmul.f32 1.442695, %v2628_v44  ;;  %v4826_v44 = vmov 0.0|0.0  }
0x145f   :  { %v2792_v45 = vpop.xlane.xlu0 %2791 }
0x1460   :  { %4789 = vpow2.f32 %v2629_v63  ;;  %v2793_v46 = vsub.f32 %v2786_v13, %v2792_v45 }
0x1462   :  { %v2794_v47 = vmul.f32 1.442695, %v2793_v46 }
0x1464   :  { %4791 = vpow2.f32 %v2794_v47 }
0x146a   :  { %v4790_v48 = vpop.eup %4789 }
0x146b   :  { %v2631_v49 = vsel %vm300_vm4, %v4790_v48, 0.0 }
0x146c   :  { %2632 = vadd.xlane.f32.xlu0 %v2631_v49 }
0x146e   :  { %v4792_v50 = vpop.eup %4791 }
0x146f   :  { %v2796_v52 = vsel %vm300_vm4, %v4792_v50, 0.0 }
0x1470   :  { %2797 = vadd.xlane.f32.xlu0 %v2796_v52 }
0x1486   :  { %2801 = vrot.lane.b32.xlu0 %v5220_v36, %s4824_s15 }
0x14b6   :  { %v4580_v54 = vpop.f32.mrb[22].mxu0 }
0x14b7   :  { %v2311_v57 = vadd.f32 %v4580_v54, %v2228_v53  ;;  %v2305_v58 = vpop.f32.mrb[23].mxu0 }
0x14b8   :  { %v2306_v59 = vadd.f32 %v2305_v58, %v2228_v53  ;;  %v3051_v53 = vrot.slane %v5216_v31, %v5035_v55  ;;  %v3056_v58 = vrot.slane %v5216_v31, %v5038_v56 }
0x14b9   :  { %v2315_v62 = vmax.f32 %v2311_v57, 0.0 }
0x14ba   :  { %v2314_v60 = vmax.f32 %v2306_v59, 0.0 }
0x14bc   :  { %4589 = vmatprep.mubr.msk.f32.mxu0 %vm1133_vm6, %v2314_v60 }
0x14bd   :  { %4590 = vmatmul.mubr.msk.f32.vlgmr.msra.gmra.mrb[24].mxu0 %vm1133_vm6, %v2315_v62  ;;  %v2465_v62 = vld [vmem:[%s5520_s8 + $0x18] sm:$0xff] }
0x14be   :  { %4603 = vmatpush3.msra.mxu0 %v2637_v10  ;;  %4604 = vmatprep.mubr.msk.f32.mxu0 %vm4819_vm2, %v4818_v6  ;;  %v2466_v10 = vld [vmem:[%s5520_s8 + $0x20] sm:$0xf] }
0x14bf   :  { %4612 = vmatprep.subr.mxu0 %v4818_v6 }
0x14f9   :  { %v2633_v36 = vpop.xlane.xlu0 %2632 }
0x14fa   :  { %4793 = vrcp.f32 %v2633_v36  ;;  %v3153_v36 = vrot.slane %v2465_v62, 4 }
0x14fd   :  { %v2798_v1 = vpop.xlane.xlu0 %2797 }
0x14fe   :  { %4795 = vrcp.f32 %v2798_v1  ;;  %v3155_v1 = vrot.slane %v2466_v10, 4 }
0x1501   :  { %v2802_v12 = vpop.permute.xlu0 %2801 }
0x1504   :  { %v4794_v3 = vpop.eup %4793 }
0x1505   :  { %v2635_v11 = vmul.f32 %v4794_v3, %v4790_v48 }
0x1507   :  { %4605 = vmatmul.mubr.msk.f32.vlgmr.msra.gmra.mrb[26].mxu0 %vm300_vm4, %v2635_v11  ;;  %v3156_v11 = vsel %vm66_vm0, %v3153_v36, %v3155_v1 }
0x1508   :  { %v4796_v13 = vpop.eup %4795  ;;  %4613 = vmatpush3.msra.mxu0 %v2802_v12  ;;  %4614 = vmatprep.mubr.msk.f32.mxu0 %vm4819_vm2, %v4818_v6 }
0x1509   :  { %v2800_v15 = vmul.f32 %v4796_v13, %v4792_v50  ;;  %4622 = vmatprep.subr.mxu0 %v4818_v6  ;;  %v3061_v13 = vrot.slane %v5216_v31, %v5056_v18 }
0x150b   :  { %4615 = vmatmul.mubr.msk.f32.vlgmr.msra.gmra.mrb[28].mxu0 %vm300_vm4, %v2800_v15 }
0x150c   :  { %4624 = vmatprep.mubr.msk.f32.mxu0 %vm4819_vm2, %v4818_v6  ;;  %4623 = vmatpush3.msk.msra.mxu0 %vm813_vm5, %v2462_v16 }
0x150d   :  { %4720 = vmatprep.subr.bf16.mxu0 %v4826_v44 }
0x1590   :  { %v4591_v19 = vpop.f32.mrb[24].mxu0 }
0x1591   :  { %v5314_v20 = vadd.f32 %v4591_v19, %v5311_v14  ;;  %v5316_v7 = vpop.f32.mrb[25].mxu0 }
0x15da   :  { %v2708_v22 = vpop.f32.mrb[26].mxu0 }
0x15db   :  { %v4606_v24 = vpop.f32.mrb[27].mxu0  ;;  %4625 = vmatmul.mubr.msk.f32.vlgmr.msra.gmra.mrb[30].mxu0 %vm148_vm3, %v2708_v22  ;;  %v3143_v22 = vrot.slane %v5216_v31, %v5065_v26 }
0x15dc   :  { %4640 = vmatprep.mubr.msk.f32.mxu0 %vm4819_vm2, %v4818_v6 }
0x15de   :  { %v2873_v25 = vpop.f32.mrb[28].mxu0 }
0x15df   :  { %v4616_v28 = vpop.f32.mrb[29].mxu0  ;;  %4620 = vmatmul.mubr.msk.f32.vlgmr.msra.gmra.mrb[28].mxu1 %vm148_vm3, %v2873_v25 }
0x15e0   :  { %4629 = vmatprep.mubr.msk.f32.mxu1 %vm4819_vm2, %v4818_v6 }
0x16ae   :  { %v3025_v8 = vpop.f32.mrb[30].mxu0 }
0x16af   :  { %v4626_v32 = vpop.f32.mrb[31].mxu0 }
0x16b2   :  { %v2950_v34 = vpop.f32.mrb[28].mxu1 }
0x16b3   :  { %v3026_v35 = vadd.f32 %v3025_v8, %v2950_v34  ;;  %v4621_v37 = vpop.f32.mrb[29].mxu1 }
0x16b5   :  { %v3033_v38 = vadd.f32 %v3032_v33, %v3026_v35 }
0x16b7   :  { %v3034_v39 = vadd.f32 %v3033_v38, %v5202_v30  ;;  %v2463_v30 = vld [vmem:[%s5520_s8 + $0x8] sm:$0xff] }
0x16b8   :  { %v3149_v63 = vrot.slane %v2463_v30, 4 }
0x16b9   :  { %v3035_v40 = vsel %vm59_vm1, %v3034_v39, 0.0 }
0x16ba   :  { %3036 = vadd.xlane.f32.xlu1 %v3035_v40  ;;  %v3150_v46 = vsel %vm66_vm0, %v3148_v61, %v3149_v63 }
0x16cb   :  { %3062 = vrot.lane.b32.xlu1 %v5199_v29, %s4825_s18  ;;  %v2464_v29 = vld [vmem:[%s5520_s8 + $0x10] sm:$0xff] }
0x16cc   :  { %v3151_v45 = vrot.slane %v2464_v29, 4  ;;  %v5389_v29 = vld [vmem:[%s5519_s9 + $0x8] sm:$0xff] }
0x16ce   :  { %v3152_v47 = vsel %vm66_vm0, %v3149_v63, %v3151_v45  ;;  %v3154_v3 = vsel %vm66_vm0, %v3151_v45, %v3153_v36  ;;  %v3271_v63 = vrot.slane %v5389_v29, %v4927_v9 }
0x16cf   :  { %v4721_v48 = vpack.c.bf16 %v3152_v47, %v3150_v46  ;;  %v4724_v12 = vpack.c.bf16 %v3156_v11, %v3154_v3 }
0x16d1   :  { %4722 = vmatpush3.bf16.msra.mxu0 %v4721_v48 }
0x16d2   :  { %4723 = vmatprep.subr.bf16.mxu0 %v4826_v44 }
0x16d5   :  { %4725 = vmatpush3.bf16.msra.mxu0 %v4724_v12 }
0x16d6   :  { %4653 = vmatprep.subr.mxu0 %v4818_v6 }
0x1747   :  { %v3037_v41 = vpop.xlane.xlu1 %3036 }
0x1748   :  { %v3038_v5 = vmul.f32 0.25, %v3037_v41 }
0x174a   :  { %v3039_v4 = vsub.f32 %v3034_v39, %v3038_v5  ;;  %v5371_v39 = vld [vmem:[%s5518_s7 + $0x4] sm:$0xf] }
0x174b   :  { %v3063_v43 = vpop.permute.xlu1 %3062 }
0x174c   :  { %v3040_v2 = vmul.f32 %v3039_v4, %v3039_v4  ;;  %4628 = vmatpush3.msk.msra.mxu1 %vm66_vm0, %v3063_v43  ;;  %v3256_v43 = vrot.slane %v5216_v31, %v5087_v0 }
0x174d   :  { %4643 = vmatprep.subr.mxu1 %v4818_v6 }
0x174e   :  { %v3041_v42 = vsel %vm59_vm1, %v3040_v2, 0.0 }
0x174f   :  { %3042 = vadd.xlane.f32.xlu0 %v3041_v42 }
0x17dc   :  { %v3043_v49 = vpop.xlane.xlu0 %3042 }
0x17dd   :  { %v3044_v50 = vmul.f32 0.25, %v3043_v49 }
0x17df   :  { %v3045_v52 = vadd.f32 1e-05, %v3044_v50 }
0x17e1   :  { %4797 = vrsqrt.f32 %v3045_v52 }
0x17eb   :  { %v4798_v54 = vpop.eup %4797 }
0x17ec   :  { %v3047_v57 = vmul.f32 %v4798_v54, %v3039_v4  ;;  %v3251_v4 = vrot.slane %v5216_v31, %v5084_v51 }
0x17ee   :  { %v3052_v59 = vmul.f32 %v3051_v53, %v3047_v57 }
0x17f0   :  { %v3057_v60 = vadd.f32 %v3056_v58, %v3052_v59 }
0x17f2   :  { %4630 = vmatmul.mubr.msk.f32.vlgmr.msra.gmra.mrb[30].mxu1 %vm59_vm1, %v3057_v60 }
0x17f3   :  { %4645 = vmatprep.mubr.msk.f32.mxu1 %vm4819_vm2, %v4818_v6  ;;  %4644 = vmatpush3.msk.msra.mxu1 %vm66_vm0, %v5371_v39 }
0x17f4   :  { %4648 = vmatprep.subr.mxu1 %v4818_v6 }
0x18c5   :  { %v3135_v15 = vpop.f32.mrb[30].mxu1 }
0x18c6   :  { %v3136_v16 = vadd.f32 %v3135_v15, %v3061_v13  ;;  %v4631_v17 = vpop.f32.mrb[31].mxu1 }
0x18c8   :  { %v3139_v19 = vmax.f32 %v3136_v16, 0.0 }
0x18ca   :  { %4641 = vmatmul.mubr.msk.f32.vlgmr.msra.gmra.mrb[32].mxu0 %vm1133_vm6, %v3139_v19 }
0x18cb   :  { %4655 = vmatprep.mubr.msk.f32.mxu0 %vm4819_vm2, %v4818_v6 }
0x199d   :  { %v3230_v24 = vpop.f32.mrb[32].mxu0 }
0x199e   :  { %v3231_v25 = vadd.f32 %v3230_v24, %v3143_v22  ;;  %v4642_v28 = vpop.f32.mrb[33].mxu0 }
0x199f   :  { %v4310_v28 = vld [vmem:[%s5520_s8 + $0x28] sm:$0xff] }
0x19a0   :  { %v3234_v8 = vadd.f32 %v3231_v25, %v3057_v60 }
0x19a2   :  { %v3235_v32 = vsel %vm59_vm1, %v3234_v8, 0.0 }
0x19a3   :  { %3236 = vadd.xlane.f32.xlu0 %v3235_v32 }
0x1a30   :  { %v3237_v33 = vpop.xlane.xlu0 %3236 }
0x1a31   :  { %v3238_v34 = vmul.f32 0.25, %v3237_v33 }
0x1a33   :  { %v3239_v35 = vsub.f32 %v3234_v8, %v3238_v34  ;;  %v3678_v8 = vrot.slane %v4310_v28, 2 }
0x1a35   :  { %v3240_v37 = vmul.f32 %v3239_v35, %v3239_v35 }
0x1a37   :  { %v3241_v38 = vsel %vm59_vm1, %v3240_v37, 0.0 }
0x1a38   :  { %3242 = vadd.xlane.f32.xlu1 %v3241_v38 }
0x1ac5   :  { %v3243_v40 = vpop.xlane.xlu1 %3242 }
0x1ac6   :  { %v3244_v41 = vmul.f32 0.25, %v3243_v40  ;;  %v3832_v40 = vrot.slane %v5389_v29, %v5012_v23 }
0x1ac8   :  { %v3245_v5 = vadd.f32 1e-05, %v3244_v41 }
0x1aca   :  { %4799 = vrsqrt.f32 %v3245_v5 }
0x1ad4   :  { %v4800_v2 = vpop.eup %4799 }
0x1ad5   :  { %v3247_v42 = vmul.f32 %v4800_v2, %v3239_v35 }
0x1ad7   :  { %v3252_v61 = vmul.f32 %v3251_v4, %v3247_v42 }
0x1ad9   :  { %v5380_v30 = vadd.f32 %v3256_v43, %v3252_v61  ;;  %v2410_v61 = vadd.f32 %v5316_v7, %v5311_v14  ;;  %v4312_v14 = vld [vmem:[%s5520_s8 + $0x38] sm:$0xff] }
0x1adb   :  { %4646 = vmatmul.mubr.msk.f32.vlgmr.msra.gmra.mrb[32].mxu1 %vm59_vm1, %v5380_v30 }
0x1adc   :  { %4650 = vmatprep.mubr.msk.f32.mxu1 %vm4819_vm2, %v4818_v6 }
0x1bae   :  { %v3344_v45 = vpop.f32.mrb[32].mxu1 }
0x1baf   :  { %v3345_v46 = vadd.f32 %v3344_v45, %v3271_v63  ;;  %v4647_v31 = vpop.f32.mrb[33].mxu1  ;;  %v2418_v63 = vadd.f32 %v2410_v61, %v5259_v21  ;;  %v4311_v21 = vld [vmem:[%s5520_s8 + $0x30] sm:$0xff] }
0x1bb0   :  { %v3949_v7 = vrot.slane %v4311_v21, 4 }
0x1bb1   :  { %3349 = vrot.lane.b32.xlu0 %v3345_v46, %s4820_s29  ;;  %v2420_v45 = vsel %vm59_vm1, %v2418_v63, 0.0 }
0x1bb5   :  { %3514 = vrot.lane.b32.xlu0 %v3345_v46, %s4822_s13 }
0x1bb9   :  { %3512 = vrot.lane.b32.xlu0 %v3345_v46, %s4823_s14 }
0x1c23   :  { %v3350_v47 = vpop.permute.xlu0 %3349 }
0x1c24   :  { %4649 = vmatpush3.xpose.msk.msra.mxu1 %vm148_vm3, %v3350_v47 }
0x1c25   :  { %4658 = vmatprep.subr.mxu1 %v4818_v6 }
0x1c27   :  { %4651 = vmatmul.mubr.msk.f32.vlgmr.msra.gmra.mrb[34].mxu1 %vm148_vm3, %v3345_v46  ;;  %v3515_v48 = vpop.permute.xlu0 %3514 }
0x1c28   :  { %4659 = vmatpush3.xpose.msk.msra.mxu1 %vm148_vm3, %v3515_v48  ;;  %4660 = vmatprep.mubr.msk.f32.mxu1 %vm4819_vm2, %v4818_v6 }
0x1c29   :  { %4668 = vmatprep.subr.mxu1 %v4818_v6 }
0x1c2b   :  { %v3513_v9 = vpop.permute.xlu0 %3512 }
0x1c2c   :  { %4661 = vmatmul.mubr.msk.f32.vlgmr.msra.gmra.mrb[36].mxu1 %vm148_vm3, %v3513_v9  ;;  %v3951_v9 = vrot.slane %v4312_v14, 4 }
0x1c2d   :  { %4670 = vmatprep.mubr.msk.f32.mxu1 %vm4819_vm2, %v4818_v6  ;;  %4669 = vmatpush3.msk.msra.mxu1 %vm813_vm5, %v3678_v8 }
0x1c2e   :  { %4678 = vmatprep.subr.mxu1 %v4818_v6 }
0x1cfa   :  { %v3421_v49 = vpop.f32.mrb[34].mxu1 }
0x1cfb   :  { %v4652_v50 = vpop.f32.mrb[35].mxu1  ;;  %v3425_v52 = vsel %vm300_vm4, %v3421_v49, -inf }
0x1cfc   :  { %3426 = vmax.xlane.f32.xlu0 %v3425_v52  ;;  %v3952_v50 = vsel %vm66_vm0, %v3949_v7, %v3951_v9 }
0x1cff   :  { %v3586_v53 = vpop.f32.mrb[36].mxu1 }
0x1d00   :  { %v4662_v54 = vpop.f32.mrb[37].mxu1  ;;  %v3590_v57 = vsel %vm300_vm4, %v3586_v53, -inf }
0x1d01   :  { %3591 = vmax.xlane.f32.xlu1 %v3590_v57 }
0x1d12   :  { %3601 = vrot.lane.b32.xlu0 %v3345_v46, %s4824_s15 }
0x1d89   :  { %v3427_v58 = vpop.xlane.xlu0 %3426 }
0x1d8a   :  { %v3428_v59 = vsub.f32 %v3421_v49, %v3427_v58  ;;  %v3851_v58 = vrot.slane %v5389_v29, %v5035_v55  ;;  %v4314_v55 = vld [vmem:[%s5520_s8 + $0x48] sm:$0xf] }
0x1d8c   :  { %v3429_v60 = vmul.f32 1.442695, %v3428_v59 }
0x1d8d   :  { %v3602_v22 = vpop.permute.xlu0 %3601 }
0x1d8e   :  { %4801 = vpow2.f32 %v3429_v60  ;;  %v3592_v62 = vpop.xlane.xlu1 %3591 }
0x1d8f   :  { %v3593_v10 = vsub.f32 %v3586_v53, %v3592_v62  ;;  %v3856_v62 = vrot.slane %v5389_v29, %v5038_v56 }
0x1d91   :  { %v3594_v36 = vmul.f32 1.442695, %v3593_v10 }
0x1d93   :  { %4803 = vpow2.f32 %v3594_v36 }
0x1d98   :  { %v4802_v1 = vpop.eup %4801 }
0x1d99   :  { %v3431_v3 = vsel %vm300_vm4, %v4802_v1, 0.0 }
0x1d9a   :  { %3432 = vadd.xlane.f32.xlu1 %v3431_v3  ;;  %v3955_v3 = vrot.slane %v4314_v55, 4 }
0x1d9d   :  { %v4804_v11 = vpop.eup %4803 }
0x1d9e   :  { %v3596_v12 = vsel %vm300_vm4, %v4804_v11, 0.0 }
0x1d9f   :  { %3597 = vadd.xlane.f32.xlu1 %v3596_v12 }
0x1db0   :  { %3436 = vrot.lane.b32.xlu1 %v3345_v46, %s4821_s30 }
0x1e27   :  { %v3433_v13 = vpop.xlane.xlu1 %3432 }
0x1e28   :  { %4805 = vrcp.f32 %v3433_v13  ;;  %v3861_v13 = vrot.slane %v5389_v29, %v5056_v18  ;;  %v2419_v18 = vadd.f32 %v5314_v20, %v5263_v27  ;;  %v4063_v20 = vld [vmem:[%s5521_s10 + $0x4] sm:$0xf] }
0x1e2c   :  { %v3598_v15 = vpop.xlane.xlu1 %3597 }
0x1e2d   :  { %4807 = vrcp.f32 %v3598_v15 }
0x1e30   :  { %v3437_v16 = vpop.permute.xlu1 %3436 }
0x1e31   :  { %4654 = vmatpush3.msra.mxu0 %v3437_v16 }
0x1e32   :  { %v4806_v17 = vpop.eup %4805  ;;  %4663 = vmatprep.subr.mxu0 %v4818_v6 }
0x1e33   :  { %v3435_v19 = vmul.f32 %v4806_v17, %v4802_v1 }
0x1e35   :  { %4656 = vmatmul.mubr.msk.f32.vlgmr.msra.gmra.mrb[34].mxu0 %vm300_vm4, %v3435_v19 }
0x1e36   :  { %4664 = vmatpush3.msra.mxu0 %v3602_v22  ;;  %4665 = vmatprep.mubr.msk.f32.mxu0 %vm4819_vm2, %v4818_v6  ;;  %v3943_v22 = vrot.slane %v5389_v29, %v5065_v26 }
0x1e37   :  { %v4808_v24 = vpop.eup %4807  ;;  %4673 = vmatprep.subr.mxu0 %v4818_v6 }
0x1e38   :  { %v3600_v25 = vmul.f32 %v4808_v24, %v4804_v11 }
0x1e3a   :  { %4666 = vmatmul.mubr.msk.f32.vlgmr.msra.gmra.mrb[36].mxu0 %vm300_vm4, %v3600_v25 }
0x1e3b   :  { %4675 = vmatprep.mubr.msk.f32.mxu0 %vm4819_vm2, %v4818_v6  ;;  %4674 = vmatpush3.msk.msra.mxu0 %vm813_vm5, %v4310_v28 }
0x1e3c   :  { %4726 = vmatprep.subr.bf16.mxu0 %v4826_v44 }
0x1f08   :  { %v3508_v32 = vpop.f32.mrb[34].mxu0 }
0x1f09   :  { %v4657_v33 = vpop.f32.mrb[35].mxu0  ;;  %4676 = vmatmul.mubr.msk.f32.vlgmr.msra.gmra.mrb[38].mxu0 %vm148_vm3, %v3508_v32 }
0x1f0a   :  { %4691 = vmatprep.mubr.msk.f32.mxu0 %vm4819_vm2, %v4818_v6 }
0x1f0d   :  { %v3673_v34 = vpop.f32.mrb[36].mxu0 }
0x1f0e   :  { %v4667_v35 = vpop.f32.mrb[37].mxu0  ;;  %4671 = vmatmul.mubr.msk.f32.vlgmr.msra.gmra.mrb[38].mxu1 %vm148_vm3, %v3673_v34 }
0x1f0f   :  { %4680 = vmatprep.mubr.msk.f32.mxu1 %vm4819_vm2, %v4818_v6 }
0x1fdc   :  { %v3825_v37 = vpop.f32.mrb[38].mxu0 }
0x1fdd   :  { %v4677_v38 = vpop.f32.mrb[39].mxu0 }
0x1fe1   :  { %v3750_v41 = vpop.f32.mrb[38].mxu1 }
0x1fe2   :  { %v3826_v5 = vadd.f32 %v3825_v37, %v3750_v41  ;;  %v4672_v4 = vpop.f32.mrb[39].mxu1  ;;  %v2423_v37 = vsel %vm59_vm1, %v2419_v18, 0.0 }
0x1fe4   :  { %v3833_v2 = vadd.f32 %v3832_v40, %v3826_v5 }
0x1fe6   :  { %v3834_v42 = vadd.f32 %v3833_v2, %v5380_v30 }
0x1fe8   :  { %v3835_v43 = vsel %vm59_vm1, %v3834_v42, 0.0 }
0x1fe9   :  { %3836 = vadd.xlane.f32.xlu1 %v3835_v43 }
0x1ffa   :  { %3862 = vrot.lane.b32.xlu1 %v5371_v39, %s4825_s18  ;;  %v3948_v39 = vrot.slane %v4310_v28, 4 }
0x1ffc   :  { %v3950_v49 = vsel %vm66_vm0, %v3948_v39, %v3949_v7 }
0x1ffd   :  { %v4727_v52 = vpack.c.bf16 %v3952_v50, %v3950_v49  ;;  %v4817_v49 = vld [vmem:[%s5514_s6 + $0x8] sm:$0xff] }
0x1ffe   :  { %v2449_v50 = vrot.slane %v4817_v49, %v5084_v51 }
0x1fff   :  { %4728 = vmatpush3.bf16.msra.mxu0 %v4727_v52 }
0x2000   :  { %4729 = vmatprep.subr.bf16.mxu0 %v4826_v44  ;;  %v4313_v44 = vld [vmem:[%s5520_s8 + $0x40] sm:$0xff] }
0x2001   :  { %v3953_v1 = vrot.slane %v4313_v44, 4  ;;  %v4062_v44 = vld [vmem:[%s5521_s10] sm:$0xf] }
0x2003   :  { %v3954_v11 = vsel %vm66_vm0, %v3951_v9, %v3953_v1  ;;  %v3956_v56 = vsel %vm66_vm0, %v3953_v1, %v3955_v3  ;;  %v4051_v9 = vrot.slane %v5389_v29, %v5084_v51 }
0x2004   :  { %v4730_v12 = vpack.c.bf16 %v3956_v56, %v3954_v11 }
0x2006   :  { %4731 = vmatpush3.bf16.msra.mxu0 %v4730_v12 }
0x201e   :  { %2421 = vadd.xlane.f32.xlu1 %v2420_v45 }
0x2076   :  { %v3837_v23 = vpop.xlane.xlu1 %3836 }
0x2077   :  { %v3838_v46 = vmul.f32 0.25, %v3837_v23 }
0x2079   :  { %v3839_v31 = vsub.f32 %v3834_v42, %v3838_v46 }
0x207a   :  { %v3863_v47 = vpop.permute.xlu1 %3862 }
0x207b   :  { %v3840_v48 = vmul.f32 %v3839_v31, %v3839_v31  ;;  %4679 = vmatpush3.msk.msra.mxu1 %vm66_vm0, %v3863_v47 }
0x207c   :  { %4694 = vmatprep.subr.mxu1 %v4818_v6 }
0x207d   :  { %v3841_v30 = vsel %vm59_vm1, %v3840_v48, 0.0 }
0x207e   :  { %3842 = vadd.xlane.f32.xlu0 %v3841_v30 }
0x20ab   :  { %v2422_v24 = vpop.xlane.xlu1 %2421 }
0x20ac   :  { %v2426_v28 = vmul.f32 0.25, %v2422_v24 }
0x20ae   :  { %v2428_v34 = vsub.f32 %v2418_v63, %v2426_v28 }
0x20b0   :  { %v2430_v38 = vmul.f32 %v2428_v34, %v2428_v34 }
0x20b2   :  { %v2432_v40 = vsel %vm59_vm1, %v2430_v38, 0.0 }
0x210b   :  { %v3843_v53 = vpop.xlane.xlu0 %3842 }
0x210c   :  { %v3844_v54 = vmul.f32 0.25, %v3843_v53 }
0x210e   :  { %v3845_v57 = vadd.f32 1e-05, %v3844_v54  ;;  %v4056_v54 = vrot.slane %v5389_v29, %v5087_v0 }
0x2110   :  { %4809 = vrsqrt.f32 %v3845_v57 }
0x211a   :  { %v4810_v59 = vpop.eup %4809 }
0x211b   :  { %v3847_v60 = vmul.f32 %v4810_v59, %v3839_v31  ;;  %v2455_v59 = vrot.slane %v4817_v49, %v5087_v0 }
0x211d   :  { %v3852_v10 = vmul.f32 %v3851_v58, %v3847_v60 }
0x211f   :  { %v3857_v36 = vadd.f32 %v3856_v62, %v3852_v10 }
0x2121   :  { %4681 = vmatmul.mubr.msk.f32.vlgmr.msra.gmra.mrb[40].mxu1 %vm59_vm1, %v3857_v36 }
0x2122   :  { %4696 = vmatprep.mubr.msk.f32.mxu1 %vm4819_vm2, %v4818_v6  ;;  %4695 = vmatpush3.msk.msra.mxu1 %vm66_vm0, %v4063_v20 }
0x2123   :  { %4699 = vmatprep.subr.mxu1 %v4818_v6 }
0x21f4   :  { %v3935_v15 = vpop.f32.mrb[40].mxu1 }
0x21f5   :  { %v3936_v16 = vadd.f32 %v3935_v15, %v3861_v13  ;;  %v4682_v17 = vpop.f32.mrb[41].mxu1 }
0x21f7   :  { %v3939_v19 = vmax.f32 %v3936_v16, 0.0 }
0x21f9   :  { %4692 = vmatmul.mubr.msk.f32.vlgmr.msra.gmra.mrb[40].mxu0 %vm1133_vm6, %v3939_v19 }
0x22cc   :  { %v4030_v25 = vpop.f32.mrb[40].mxu0 }
0x22cd   :  { %v4031_v8 = vadd.f32 %v4030_v25, %v3943_v22  ;;  %v4693_v32 = vpop.f32.mrb[41].mxu0 }
0x22cf   :  { %v4034_v33 = vadd.f32 %v4031_v8, %v3857_v36 }
0x22d1   :  { %v4035_v35 = vsel %vm59_vm1, %v4034_v33, 0.0 }
0x22d2   :  { %4036 = vadd.xlane.f32.xlu0 %v4035_v35 }
0x22d6   :  { %2424 = vadd.xlane.f32.xlu0 %v2423_v37 }
0x22da   :  { %2433 = vadd.xlane.f32.xlu0 %v2432_v40 }
0x235f   :  { %v4037_v26 = vpop.xlane.xlu0 %4036 }
0x2360   :  { %v4038_v41 = vmul.f32 0.25, %v4037_v26 }
0x2362   :  { %v4039_v5 = vsub.f32 %v4034_v33, %v4038_v41 }
0x2363   :  { %v2425_v4 = vpop.xlane.xlu0 %2424 }
0x2364   :  { %v2427_v2 = vmul.f32 0.25, %v2425_v4  ;;  %v4040_v42 = vmul.f32 %v4039_v5, %v4039_v5 }
0x2366   :  { %v2429_v43 = vsub.f32 %v2419_v18, %v2427_v2  ;;  %v4041_v61 = vsel %vm59_vm1, %v4040_v42, 0.0 }
0x2367   :  { %4042 = vadd.xlane.f32.xlu0 %v4041_v61  ;;  %v2434_v45 = vpop.xlane.xlu0 %2433 }
0x2368   :  { %v2431_v63 = vmul.f32 %v2429_v43, %v2429_v43  ;;  %v2438_v23 = vmul.f32 0.25, %v2434_v45 }
0x236a   :  { %v2435_v27 = vsel %vm59_vm1, %v2431_v63, 0.0  ;;  %v2440_v46 = vadd.f32 1e-05, %v2438_v23 }
0x236b   :  { %2436 = vadd.xlane.f32.xlu0 %v2435_v27 }
0x236c   :  { %4811 = vrsqrt.f32 %v2440_v46 }
0x2376   :  { %v4812_v14 = vpop.eup %4811 }
0x2377   :  { %v2444_v7 = vmul.f32 %v4812_v14, %v2428_v34 }
0x2379   :  { %v2450_v58 = vmul.f32 %v2449_v50, %v2444_v7 }
0x237b   :  { %v2456_v51 = vadd.f32 %v2455_v59, %v2450_v58 }
0x237d   :  { %v4142_v29 = vrot.slane %v2456_v51, 7 }
0x23f4   :  { %v4043_v31 = vpop.xlane.xlu0 %4042 }
0x23f5   :  { %v4044_v47 = vmul.f32 0.25, %v4043_v31 }
0x23f7   :  { %v4045_v48 = vadd.f32 1e-05, %v4044_v47 }
0x23f8   :  { %v2437_v30 = vpop.xlane.xlu0 %2436 }
0x23f9   :  { %4813 = vrsqrt.f32 %v4045_v48  ;;  %v2439_v39 = vmul.f32 0.25, %v2437_v30 }
0x23fb   :  { %v2441_v21 = vadd.f32 1e-05, %v2439_v39 }
0x23fd   :  { %4815 = vrsqrt.f32 %v2441_v21 }
0x2403   :  { %v4814_v52 = vpop.eup %4813 }
0x2404   :  { %v4047_v53 = vmul.f32 %v4814_v52, %v4039_v5 }
0x2406   :  { %v4052_v57 = vmul.f32 %v4051_v9, %v4047_v53 }
0x2407   :  { %v4816_v60 = vpop.eup %4815 }
0x2408   :  { %v2445_v62 = vmul.f32 %v4816_v60, %v2429_v43  ;;  %v4057_v10 = vadd.f32 %v4056_v54, %v4052_v57 }
0x240a   :  { %v4061_v36 = vrot.slane %v4057_v10, %v5087_v0  ;;  %v2451_v55 = vmul.f32 %v2449_v50, %v2445_v62  ;;  %v17_v0 = vstv %s5522_s11 }
0x240b   :  { %18 = vst [vmem:[#allocation2] sm:$0x1] %v17_v0 }
0x240c   :  { %4697 = vmatmul.mubr.msk.f32.vlgmr.msra.gmra.mrb[42].mxu1 %vm59_vm1, %v4061_v36  ;;  %v2457_v1 = vadd.f32 %v2455_v59, %v2451_v55 }
0x240d   :  { %4700 = vmatpush3.msk.msra.mxu1 %vm66_vm0, %v4062_v44  ;;  %4701 = vmatprep.mubr.msk.f32.mxu1 %vm4819_vm2, %v4818_v6 }
0x240e   :  { %v4143_v3 = vrot.slane %v2457_v1, 6 }
0x2410   :  { %v4145_v11 = vsel %vm4144_vm7, %v4143_v3, %v4142_v29 }
0x2411   :  { %4702 = vmatmul.mubr.msk.f32.vlgmr.msra.gmra.mrb[44].mxu1 %vm59_vm1, %v4145_v11 }
0x2412   :  { %v4335_v15 = vld [vmem:[#allocation2] ss:$0 sm:$0xff] }
0x24df   :  { %v4136_v56 = vpop.f32.mrb[42].mxu1 }
0x24e0   :  { %v4698_v12 = vpop.f32.mrb[43].mxu1 }
0x24e4   :  { %v4217_v13 = vpop.f32.mrb[44].mxu1 }
0x24e5   :  { %v4218_v16 = vadd.f32 %v4217_v13, %v4136_v56  ;;  %v4703_v17 = vpop.f32.mrb[45].mxu1 }
0x24e7   :  { %v4228_v19 = vadd.f32 %v4335_v15, %v4218_v16 }
0x24e9   :  { %4230 = vst.msk [vmem:[%s5523_s12] sm:$0x3] %vm4229_vm8, %v4228_v19 }

</bundles_post_ra>
